<compile_context>
chip_gen: v6e
topology: v6e:2x2x1
jax: 0.10.0
libtpu: 0.0.40
codegen_flags: <defaults>
</compile_context>

<pallas_src>
import functools

import jax
import jax.numpy as jnp
from jax.experimental import pallas as pl
from jax.experimental.pallas import tpu as pltpu


def _round_up(a, b):
    return ((a + b - 1) // b) * b


def _symbolic_kernel(w1_ref, w2_ref, w3_ref, xt_ref, o_ref, *, d_in, d_out):
    """Lane-dense forward on one batch tile.

    w1_ref : SMEM [2, d_in]        (scale folded in)
    w2_ref : SMEM [2, d_in + 1]    (scale folded in)
    w3_ref : SMEM [d_out, d_in + 2] (scale folded in)
    xt_ref : VMEM [d_in,  block_n]  (features on sublanes, batch on lanes)
    o_ref  : VMEM [d_out, block_n]
    """
    x = xt_ref[...]                          # [d_in, block_n] f32

    def xrow(d):
        return x[d:d + 1, :]                 # [1, block_n]

    # h1 rows 0 and 1 (the only ones consumed by the binary op).
    h1 = []
    for j in range(2):
        acc = w1_ref[j, 0] * xrow(0)
        for d in range(1, d_in):
            acc = acc + w1_ref[j, d] * xrow(d)
        h1.append(acc)
    p1 = h1[0] * h1[1]                       # [1, block_n]

    # h2 rows 0 and 1:  X part + p1 * (appended column of W2).
    h2 = []
    for j in range(2):
        acc = w2_ref[j, 0] * xrow(0)
        for d in range(1, d_in):
            acc = acc + w2_ref[j, d] * xrow(d)
        acc = acc + w2_ref[j, d_in] * p1
        h2.append(acc)
    p2 = h2[0] * h2[1]                       # [1, block_n]

    # h3: X part + p1 / p2 appended columns of W3.
    for k in range(d_out):
        acc = w3_ref[k, 0] * xrow(0)
        for d in range(1, d_in):
            acc = acc + w3_ref[k, d] * xrow(d)
        acc = acc + w3_ref[k, d_in] * p1 + w3_ref[k, d_in + 1] * p2
        o_ref[k:k + 1, :] = acc.astype(o_ref.dtype)


def symbolic_net_forward(x, w1, w2, w3, *, d_in_r, h, no_biop, d_out_r,
                         scale_fac=1.0, block_n=2048):
    """Pallas forward pass of SymbolicNet.

    x  : [N, D_in_r]
    w1 : [H0, D_in_r]                              (torch Linear weight layout)
    w2 : [H1, H0 - No_BiOp0 + D_in_r]
    w3 : [D_out_r, H1 - No_BiOp1 + D_in_r + No_BiOp0]
    """
    n, d = x.shape
    h0, h1_dim = h
    assert d == d_in_r
    # The PyTorch forward only type-checks when these hold.
    assert h0 >= 2 and h1_dim >= 2, "binary op needs at least 2 hidden units"
    assert h0 - no_biop[0] + d_in_r == d_in_r + 1, "linear2 in-dim mismatch"
    assert h1_dim - no_biop[1] + d_in_r + no_biop[0] == d_in_r + 2, "linear3 in-dim mismatch"
    assert w1.shape == (h0, d_in_r)
    assert w2.shape == (h1_dim, d_in_r + 1)
    assert w3.shape == (d_out_r, d_in_r + 2)

    # Host-side weight prep:
    #  - fold scale_fac into each layer's weights (per layer, so the quadratic
    #    effect through p1/p2 is preserved exactly as in the reference),
    #  - keep only the two rows of W1/W2 whose outputs are ever consumed.
    s = jnp.float32(scale_fac)
    w1s = (s * jnp.asarray(w1, jnp.float32))[:2]     # [2, D]
    w2s = (s * jnp.asarray(w2, jnp.float32))[:2]     # [2, D+1]
    w3s = s * jnp.asarray(w3, jnp.float32)           # [D_out, D+2]

    # Lane-dense layout: batch on the 128-lane axis. Pad N to the tile size.
    block_n = max(128, min(int(block_n), _round_up(n, 128)))
    block_n = _round_up(block_n, 128)
    n_pad = _round_up(n, block_n)

    xt = jnp.asarray(x, jnp.float32).T               # [D, N]
    if n_pad != n:
        xt = jnp.pad(xt, ((0, 0), (0, n_pad - n)))

    grid = (n_pad // block_n,)
    kernel = functools.partial(_symbolic_kernel, d_in=d_in_r, d_out=d_out_r)

    out_t = pl.pallas_call(
        kernel,
        out_shape=jax.ShapeDtypeStruct((d_out_r, n_pad), jnp.float32),
        grid=grid,
        in_specs=[
            pl.BlockSpec(memory_space=pltpu.MemorySpace.SMEM),   # w1s (scalars)
            pl.BlockSpec(memory_space=pltpu.MemorySpace.SMEM),   # w2s (scalars)
            pl.BlockSpec(memory_space=pltpu.MemorySpace.SMEM),   # w3s (scalars)
            pl.BlockSpec((d_in_r, block_n), lambda i: (0, i)),   # X.T tile
        ],
        out_specs=pl.BlockSpec((d_out_r, block_n), lambda i: (0, i)),
        compiler_params=pltpu.CompilerParams(
            dimension_semantics=("parallel",)),
    )(w1s, w2s, w3s, xt)

    # Trim padding and return batch-major, like the PyTorch module.
    return out_t[:, :n].T


def _reference_forward(x, w1, w2, w3, scale_fac=1.0):
    """Pure-JAX transcription of the PyTorch forward (uses real concat)."""
    h1 = scale_fac * (x @ w1.T)
    h1_a = jnp.concatenate([x, h1[:, :1] * h1[:, 1:2]], axis=1)
    h2 = scale_fac * (h1_a @ w2.T)
    h2_a = jnp.concatenate([h1_a, h2[:, :1] * h2[:, 1:2]], axis=1)
    h3 = scale_fac * (h2_a @ w3.T)
    return h3


if __name__ == "__main__":
    # Shapes consistent with the module's constraints:
    #   H0 - No_BiOp0 == 1  and  H1 - No_BiOp1 + No_BiOp0 == 2
    D_in_r = 4
    H = (2, 2)
    No_BiOp = (1, 1)
    D_out_r = 3

    key = jax.random.PRNGKey(0)
    kx, k1, k2, k3 = jax.random.split(key, 4)

    # weights_init: normal(std=0.01), deterministic via PRNGKey(0) splits
    w1 = 0.01 * jax.random.normal(k1, (H[0], D_in_r), dtype=jnp.float32)
    w2 = 0.01 * jax.random.normal(
        k2, (H[1], H[0] - No_BiOp[0] + D_in_r), dtype=jnp.float32)
    w3 = 0.01 * jax.random.normal(
        k3, (D_out_r, H[1] - No_BiOp[1] + D_in_r + No_BiOp[0]), dtype=jnp.float32)

    # Case 1: multi-tile grid (exercises pipelining / dual-TC sharding).
    N1 = 8192
    x1 = jax.random.normal(kx, (N1, D_in_r), dtype=jnp.float32)
    out1 = symbolic_net_forward(
        x1, w1, w2, w3, d_in_r=D_in_r, h=H, no_biop=No_BiOp,
        d_out_r=D_out_r, scale_fac=1.0, block_n=2048)
    out1 = jax.block_until_ready(out1)
    ref1 = _reference_forward(x1, w1, w2, w3, scale_fac=1.0)
    assert out1.shape == (N1, D_out_r)
    assert jnp.allclose(out1, ref1, atol=1e-6, rtol=1e-5), "mismatch (case 1)"

    # Case 2: ragged batch + non-unit scale_fac (exercises padding + folding).
    N2 = 300
    x2 = jax.random.normal(jax.random.PRNGKey(7), (N2, D_in_r), dtype=jnp.float32)
    out2 = symbolic_net_forward(
        x2, w1, w2, w3, d_in_r=D_in_r, h=H, no_biop=No_BiOp,
        d_out_r=D_out_r, scale_fac=0.5, block_n=256)
    out2 = jax.block_until_ready(out2)
    ref2 = _reference_forward(x2, w1, w2, w3, scale_fac=0.5)
    assert out2.shape == (N2, D_out_r)
    assert jnp.allclose(out2, ref2, atol=1e-6, rtol=1e-5), "mismatch (case 2)"

    print("KERNEL_OK")
</pallas_src>

<mosaic_0001>
module attributes {stable_mosaic.version = 11 : i64} {
  func.func @_symbolic_kernel(%arg0: i32, %arg1: memref<2x4xf32, #tpu.memory_space<smem>>, %arg2: memref<2x5xf32, #tpu.memory_space<smem>>, %arg3: memref<3x6xf32, #tpu.memory_space<smem>>, %arg4: memref<4x2048xf32, #tpu.memory_space<vmem>>, %arg5: memref<3x2048xf32, #tpu.memory_space<vmem>>) attributes {dimension_semantics = [#tpu.dimension_semantics<parallel>], iteration_bounds = array<i64: 4>, scalar_prefetch = 0 : i64, scratch_operands = 0 : i64, tpu.core_type = #tpu.core_type<tc>, window_params = [{transform_indices = @transform_0, window_bounds = array<i64: 2, 4>}, {transform_indices = @transform_1, window_bounds = array<i64: 2, 5>}, {transform_indices = @transform_2, window_bounds = array<i64: 3, 6>}, {transform_indices = @transform_3, window_bounds = array<i64: 4, 2048>}, {transform_indices = @transform_4, window_bounds = array<i64: 3, 2048>}]} {
    %c0 = arith.constant 0 : index
    %c0_0 = arith.constant 0 : index
    %0 = vector.load %arg4[%c0, %c0_0] : memref<4x2048xf32, #tpu.memory_space<vmem>>, vector<4x2048xf32>
    %c0_1 = arith.constant 0 : index
    %c0_2 = arith.constant 0 : index
    %1 = memref.load %arg1[%c0_1, %c0_2] : memref<2x4xf32, #tpu.memory_space<smem>>
    %2 = vector.extract_strided_slice %0 {offsets = [0, 0], sizes = [1, 2048], strides = [1, 1]} : vector<4x2048xf32> to vector<1x2048xf32>
    %3 = vector.broadcast %1 : f32 to vector<1x2048xf32>
    %4 = arith.mulf %3, %2 : vector<1x2048xf32>
    %c0_3 = arith.constant 0 : index
    %c1 = arith.constant 1 : index
    %5 = memref.load %arg1[%c0_3, %c1] : memref<2x4xf32, #tpu.memory_space<smem>>
    %6 = vector.extract_strided_slice %0 {offsets = [1, 0], sizes = [1, 2048], strides = [1, 1]} : vector<4x2048xf32> to vector<1x2048xf32>
    %7 = vector.broadcast %5 : f32 to vector<1x2048xf32>
    %8 = arith.mulf %7, %6 : vector<1x2048xf32>
    %9 = arith.addf %4, %8 : vector<1x2048xf32>
    %c0_4 = arith.constant 0 : index
    %c2 = arith.constant 2 : index
    %10 = memref.load %arg1[%c0_4, %c2] : memref<2x4xf32, #tpu.memory_space<smem>>
    %11 = vector.extract_strided_slice %0 {offsets = [2, 0], sizes = [1, 2048], strides = [1, 1]} : vector<4x2048xf32> to vector<1x2048xf32>
    %12 = vector.broadcast %10 : f32 to vector<1x2048xf32>
    %13 = arith.mulf %12, %11 : vector<1x2048xf32>
    %14 = arith.addf %9, %13 : vector<1x2048xf32>
    %c0_5 = arith.constant 0 : index
    %c3 = arith.constant 3 : index
    %15 = memref.load %arg1[%c0_5, %c3] : memref<2x4xf32, #tpu.memory_space<smem>>
    %16 = vector.extract_strided_slice %0 {offsets = [3, 0], sizes = [1, 2048], strides = [1, 1]} : vector<4x2048xf32> to vector<1x2048xf32>
    %17 = vector.broadcast %15 : f32 to vector<1x2048xf32>
    %18 = arith.mulf %17, %16 : vector<1x2048xf32>
    %19 = arith.addf %14, %18 : vector<1x2048xf32>
    %c1_6 = arith.constant 1 : index
    %c0_7 = arith.constant 0 : index
    %20 = memref.load %arg1[%c1_6, %c0_7] : memref<2x4xf32, #tpu.memory_space<smem>>
    %21 = vector.extract_strided_slice %0 {offsets = [0, 0], sizes = [1, 2048], strides = [1, 1]} : vector<4x2048xf32> to vector<1x2048xf32>
    %22 = vector.broadcast %20 : f32 to vector<1x2048xf32>
    %23 = arith.mulf %22, %21 : vector<1x2048xf32>
    %c1_8 = arith.constant 1 : index
    %c1_9 = arith.constant 1 : index
    %24 = memref.load %arg1[%c1_8, %c1_9] : memref<2x4xf32, #tpu.memory_space<smem>>
    %25 = vector.extract_strided_slice %0 {offsets = [1, 0], sizes = [1, 2048], strides = [1, 1]} : vector<4x2048xf32> to vector<1x2048xf32>
    %26 = vector.broadcast %24 : f32 to vector<1x2048xf32>
    %27 = arith.mulf %26, %25 : vector<1x2048xf32>
    %28 = arith.addf %23, %27 : vector<1x2048xf32>
    %c1_10 = arith.constant 1 : index
    %c2_11 = arith.constant 2 : index
    %29 = memref.load %arg1[%c1_10, %c2_11] : memref<2x4xf32, #tpu.memory_space<smem>>
    %30 = vector.extract_strided_slice %0 {offsets = [2, 0], sizes = [1, 2048], strides = [1, 1]} : vector<4x2048xf32> to vector<1x2048xf32>
    %31 = vector.broadcast %29 : f32 to vector<1x2048xf32>
    %32 = arith.mulf %31, %30 : vector<1x2048xf32>
    %33 = arith.addf %28, %32 : vector<1x2048xf32>
    %c1_12 = arith.constant 1 : index
    %c3_13 = arith.constant 3 : index
    %34 = memref.load %arg1[%c1_12, %c3_13] : memref<2x4xf32, #tpu.memory_space<smem>>
    %35 = vector.extract_strided_slice %0 {offsets = [3, 0], sizes = [1, 2048], strides = [1, 1]} : vector<4x2048xf32> to vector<1x2048xf32>
    %36 = vector.broadcast %34 : f32 to vector<1x2048xf32>
    %37 = arith.mulf %36, %35 : vector<1x2048xf32>
    %38 = arith.addf %33, %37 : vector<1x2048xf32>
    %39 = arith.mulf %19, %38 : vector<1x2048xf32>
    %c0_14 = arith.constant 0 : index
    %c0_15 = arith.constant 0 : index
    %40 = memref.load %arg2[%c0_14, %c0_15] : memref<2x5xf32, #tpu.memory_space<smem>>
    %41 = vector.extract_strided_slice %0 {offsets = [0, 0], sizes = [1, 2048], strides = [1, 1]} : vector<4x2048xf32> to vector<1x2048xf32>
    %42 = vector.broadcast %40 : f32 to vector<1x2048xf32>
    %43 = arith.mulf %42, %41 : vector<1x2048xf32>
    %c0_16 = arith.constant 0 : index
    %c1_17 = arith.constant 1 : index
    %44 = memref.load %arg2[%c0_16, %c1_17] : memref<2x5xf32, #tpu.memory_space<smem>>
    %45 = vector.extract_strided_slice %0 {offsets = [1, 0], sizes = [1, 2048], strides = [1, 1]} : vector<4x2048xf32> to vector<1x2048xf32>
    %46 = vector.broadcast %44 : f32 to vector<1x2048xf32>
    %47 = arith.mulf %46, %45 : vector<1x2048xf32>
    %48 = arith.addf %43, %47 : vector<1x2048xf32>
    %c0_18 = arith.constant 0 : index
    %c2_19 = arith.constant 2 : index
    %49 = memref.load %arg2[%c0_18, %c2_19] : memref<2x5xf32, #tpu.memory_space<smem>>
    %50 = vector.extract_strided_slice %0 {offsets = [2, 0], sizes = [1, 2048], strides = [1, 1]} : vector<4x2048xf32> to vector<1x2048xf32>
    %51 = vector.broadcast %49 : f32 to vector<1x2048xf32>
    %52 = arith.mulf %51, %50 : vector<1x2048xf32>
    %53 = arith.addf %48, %52 : vector<1x2048xf32>
    %c0_20 = arith.constant 0 : index
    %c3_21 = arith.constant 3 : index
    %54 = memref.load %arg2[%c0_20, %c3_21] : memref<2x5xf32, #tpu.memory_space<smem>>
    %55 = vector.extract_strided_slice %0 {offsets = [3, 0], sizes = [1, 2048], strides = [1, 1]} : vector<4x2048xf32> to vector<1x2048xf32>
    %56 = vector.broadcast %54 : f32 to vector<1x2048xf32>
    %57 = arith.mulf %56, %55 : vector<1x2048xf32>
    %58 = arith.addf %53, %57 : vector<1x2048xf32>
    %c0_22 = arith.constant 0 : index
    %c4 = arith.constant 4 : index
    %59 = memref.load %arg2[%c0_22, %c4] : memref<2x5xf32, #tpu.memory_space<smem>>
    %60 = vector.broadcast %59 : f32 to vector<1x2048xf32>
    %61 = arith.mulf %60, %39 : vector<1x2048xf32>
    %62 = arith.addf %58, %61 : vector<1x2048xf32>
    %c1_23 = arith.constant 1 : index
    %c0_24 = arith.constant 0 : index
    %63 = memref.load %arg2[%c1_23, %c0_24] : memref<2x5xf32, #tpu.memory_space<smem>>
    %64 = vector.extract_strided_slice %0 {offsets = [0, 0], sizes = [1, 2048], strides = [1, 1]} : vector<4x2048xf32> to vector<1x2048xf32>
    %65 = vector.broadcast %63 : f32 to vector<1x2048xf32>
    %66 = arith.mulf %65, %64 : vector<1x2048xf32>
    %c1_25 = arith.constant 1 : index
    %c1_26 = arith.constant 1 : index
    %67 = memref.load %arg2[%c1_25, %c1_26] : memref<2x5xf32, #tpu.memory_space<smem>>
    %68 = vector.extract_strided_slice %0 {offsets = [1, 0], sizes = [1, 2048], strides = [1, 1]} : vector<4x2048xf32> to vector<1x2048xf32>
    %69 = vector.broadcast %67 : f32 to vector<1x2048xf32>
    %70 = arith.mulf %69, %68 : vector<1x2048xf32>
    %71 = arith.addf %66, %70 : vector<1x2048xf32>
    %c1_27 = arith.constant 1 : index
    %c2_28 = arith.constant 2 : index
    %72 = memref.load %arg2[%c1_27, %c2_28] : memref<2x5xf32, #tpu.memory_space<smem>>
    %73 = vector.extract_strided_slice %0 {offsets = [2, 0], sizes = [1, 2048], strides = [1, 1]} : vector<4x2048xf32> to vector<1x2048xf32>
    %74 = vector.broadcast %72 : f32 to vector<1x2048xf32>
    %75 = arith.mulf %74, %73 : vector<1x2048xf32>
    %76 = arith.addf %71, %75 : vector<1x2048xf32>
    %c1_29 = arith.constant 1 : index
    %c3_30 = arith.constant 3 : index
    %77 = memref.load %arg2[%c1_29, %c3_30] : memref<2x5xf32, #tpu.memory_space<smem>>
    %78 = vector.extract_strided_slice %0 {offsets = [3, 0], sizes = [1, 2048], strides = [1, 1]} : vector<4x2048xf32> to vector<1x2048xf32>
    %79 = vector.broadcast %77 : f32 to vector<1x2048xf32>
    %80 = arith.mulf %79, %78 : vector<1x2048xf32>
    %81 = arith.addf %76, %80 : vector<1x2048xf32>
    %c1_31 = arith.constant 1 : index
    %c4_32 = arith.constant 4 : index
    %82 = memref.load %arg2[%c1_31, %c4_32] : memref<2x5xf32, #tpu.memory_space<smem>>
    %83 = vector.broadcast %82 : f32 to vector<1x2048xf32>
    %84 = arith.mulf %83, %39 : vector<1x2048xf32>
    %85 = arith.addf %81, %84 : vector<1x2048xf32>
    %86 = arith.mulf %62, %85 : vector<1x2048xf32>
    %c0_33 = arith.constant 0 : index
    %c0_34 = arith.constant 0 : index
    %87 = memref.load %arg3[%c0_33, %c0_34] : memref<3x6xf32, #tpu.memory_space<smem>>
    %88 = vector.extract_strided_slice %0 {offsets = [0, 0], sizes = [1, 2048], strides = [1, 1]} : vector<4x2048xf32> to vector<1x2048xf32>
    %89 = vector.broadcast %87 : f32 to vector<1x2048xf32>
    %90 = arith.mulf %89, %88 : vector<1x2048xf32>
    %c0_35 = arith.constant 0 : index
    %c1_36 = arith.constant 1 : index
    %91 = memref.load %arg3[%c0_35, %c1_36] : memref<3x6xf32, #tpu.memory_space<smem>>
    %92 = vector.extract_strided_slice %0 {offsets = [1, 0], sizes = [1, 2048], strides = [1, 1]} : vector<4x2048xf32> to vector<1x2048xf32>
    %93 = vector.broadcast %91 : f32 to vector<1x2048xf32>
    %94 = arith.mulf %93, %92 : vector<1x2048xf32>
    %95 = arith.addf %90, %94 : vector<1x2048xf32>
    %c0_37 = arith.constant 0 : index
    %c2_38 = arith.constant 2 : index
    %96 = memref.load %arg3[%c0_37, %c2_38] : memref<3x6xf32, #tpu.memory_space<smem>>
    %97 = vector.extract_strided_slice %0 {offsets = [2, 0], sizes = [1, 2048], strides = [1, 1]} : vector<4x2048xf32> to vector<1x2048xf32>
    %98 = vector.broadcast %96 : f32 to vector<1x2048xf32>
    %99 = arith.mulf %98, %97 : vector<1x2048xf32>
    %100 = arith.addf %95, %99 : vector<1x2048xf32>
    %c0_39 = arith.constant 0 : index
    %c3_40 = arith.constant 3 : index
    %101 = memref.load %arg3[%c0_39, %c3_40] : memref<3x6xf32, #tpu.memory_space<smem>>
    %102 = vector.extract_strided_slice %0 {offsets = [3, 0], sizes = [1, 2048], strides = [1, 1]} : vector<4x2048xf32> to vector<1x2048xf32>
    %103 = vector.broadcast %101 : f32 to vector<1x2048xf32>
    %104 = arith.mulf %103, %102 : vector<1x2048xf32>
    %105 = arith.addf %100, %104 : vector<1x2048xf32>
    %c0_41 = arith.constant 0 : index
    %c4_42 = arith.constant 4 : index
    %106 = memref.load %arg3[%c0_41, %c4_42] : memref<3x6xf32, #tpu.memory_space<smem>>
    %107 = vector.broadcast %106 : f32 to vector<1x2048xf32>
    %108 = arith.mulf %107, %39 : vector<1x2048xf32>
    %109 = arith.addf %105, %108 : vector<1x2048xf32>
    %c0_43 = arith.constant 0 : index
    %c5 = arith.constant 5 : index
    %110 = memref.load %arg3[%c0_43, %c5] : memref<3x6xf32, #tpu.memory_space<smem>>
    %111 = vector.broadcast %110 : f32 to vector<1x2048xf32>
    %112 = arith.mulf %111, %86 : vector<1x2048xf32>
    %113 = arith.addf %109, %112 : vector<1x2048xf32>
    %c0_44 = arith.constant 0 : index
    %c0_45 = arith.constant 0 : index
    %114 = vector.load %arg5[%c0_44, %c0_45] : memref<3x2048xf32, #tpu.memory_space<vmem>>, vector<1x2048xf32>
    tpu.vector_store %arg5[%c0_44, %c0_45], %113 {strides = array<i32>} : memref<3x2048xf32, #tpu.memory_space<vmem>>, vector<1x2048xf32>,
    %c1_46 = arith.constant 1 : index
    %c0_47 = arith.constant 0 : index
    %115 = memref.load %arg3[%c1_46, %c0_47] : memref<3x6xf32, #tpu.memory_space<smem>>
    %116 = vector.extract_strided_slice %0 {offsets = [0, 0], sizes = [1, 2048], strides = [1, 1]} : vector<4x2048xf32> to vector<1x2048xf32>
    %117 = vector.broadcast %115 : f32 to vector<1x2048xf32>
    %118 = arith.mulf %117, %116 : vector<1x2048xf32>
    %c1_48 = arith.constant 1 : index
    %c1_49 = arith.constant 1 : index
    %119 = memref.load %arg3[%c1_48, %c1_49] : memref<3x6xf32, #tpu.memory_space<smem>>
    %120 = vector.extract_strided_slice %0 {offsets = [1, 0], sizes = [1, 2048], strides = [1, 1]} : vector<4x2048xf32> to vector<1x2048xf32>
    %121 = vector.broadcast %119 : f32 to vector<1x2048xf32>
    %122 = arith.mulf %121, %120 : vector<1x2048xf32>
    %123 = arith.addf %118, %122 : vector<1x2048xf32>
    %c1_50 = arith.constant 1 : index
    %c2_51 = arith.constant 2 : index
    %124 = memref.load %arg3[%c1_50, %c2_51] : memref<3x6xf32, #tpu.memory_space<smem>>
    %125 = vector.extract_strided_slice %0 {offsets = [2, 0], sizes = [1, 2048], strides = [1, 1]} : vector<4x2048xf32> to vector<1x2048xf32>
    %126 = vector.broadcast %124 : f32 to vector<1x2048xf32>
    %127 = arith.mulf %126, %125 : vector<1x2048xf32>
    %128 = arith.addf %123, %127 : vector<1x2048xf32>
    %c1_52 = arith.constant 1 : index
    %c3_53 = arith.constant 3 : index
    %129 = memref.load %arg3[%c1_52, %c3_53] : memref<3x6xf32, #tpu.memory_space<smem>>
    %130 = vector.extract_strided_slice %0 {offsets = [3, 0], sizes = [1, 2048], strides = [1, 1]} : vector<4x2048xf32> to vector<1x2048xf32>
    %131 = vector.broadcast %129 : f32 to vector<1x2048xf32>
    %132 = arith.mulf %131, %130 : vector<1x2048xf32>
    %133 = arith.addf %128, %132 : vector<1x2048xf32>
    %c1_54 = arith.constant 1 : index
    %c4_55 = arith.constant 4 : index
    %134 = memref.load %arg3[%c1_54, %c4_55] : memref<3x6xf32, #tpu.memory_space<smem>>
    %135 = vector.broadcast %134 : f32 to vector<1x2048xf32>
    %136 = arith.mulf %135, %39 : vector<1x2048xf32>
    %137 = arith.addf %133, %136 : vector<1x2048xf32>
    %c1_56 = arith.constant 1 : index
    %c5_57 = arith.constant 5 : index
    %138 = memref.load %arg3[%c1_56, %c5_57] : memref<3x6xf32, #tpu.memory_space<smem>>
    %139 = vector.broadcast %138 : f32 to vector<1x2048xf32>
    %140 = arith.mulf %139, %86 : vector<1x2048xf32>
    %141 = arith.addf %137, %140 : vector<1x2048xf32>
    %c1_58 = arith.constant 1 : index
    %c0_59 = arith.constant 0 : index
    %142 = vector.load %arg5[%c1_58, %c0_59] : memref<3x2048xf32, #tpu.memory_space<vmem>>, vector<1x2048xf32>
    tpu.vector_store %arg5[%c1_58, %c0_59], %141 {strides = array<i32>} : memref<3x2048xf32, #tpu.memory_space<vmem>>, vector<1x2048xf32>,
    %c2_60 = arith.constant 2 : index
    %c0_61 = arith.constant 0 : index
    %143 = memref.load %arg3[%c2_60, %c0_61] : memref<3x6xf32, #tpu.memory_space<smem>>
    %144 = vector.extract_strided_slice %0 {offsets = [0, 0], sizes = [1, 2048], strides = [1, 1]} : vector<4x2048xf32> to vector<1x2048xf32>
    %145 = vector.broadcast %143 : f32 to vector<1x2048xf32>
    %146 = arith.mulf %145, %144 : vector<1x2048xf32>
    %c2_62 = arith.constant 2 : index
    %c1_63 = arith.constant 1 : index
    %147 = memref.load %arg3[%c2_62, %c1_63] : memref<3x6xf32, #tpu.memory_space<smem>>
    %148 = vector.extract_strided_slice %0 {offsets = [1, 0], sizes = [1, 2048], strides = [1, 1]} : vector<4x2048xf32> to vector<1x2048xf32>
    %149 = vector.broadcast %147 : f32 to vector<1x2048xf32>
    %150 = arith.mulf %149, %148 : vector<1x2048xf32>
    %151 = arith.addf %146, %150 : vector<1x2048xf32>
    %c2_64 = arith.constant 2 : index
    %c2_65 = arith.constant 2 : index
    %152 = memref.load %arg3[%c2_64, %c2_65] : memref<3x6xf32, #tpu.memory_space<smem>>
    %153 = vector.extract_strided_slice %0 {offsets = [2, 0], sizes = [1, 2048], strides = [1, 1]} : vector<4x2048xf32> to vector<1x2048xf32>
    %154 = vector.broadcast %152 : f32 to vector<1x2048xf32>
    %155 = arith.mulf %154, %153 : vector<1x2048xf32>
    %156 = arith.addf %151, %155 : vector<1x2048xf32>
    %c2_66 = arith.constant 2 : index
    %c3_67 = arith.constant 3 : index
    %157 = memref.load %arg3[%c2_66, %c3_67] : memref<3x6xf32, #tpu.memory_space<smem>>
    %158 = vector.extract_strided_slice %0 {offsets = [3, 0], sizes = [1, 2048], strides = [1, 1]} : vector<4x2048xf32> to vector<1x2048xf32>
    %159 = vector.broadcast %157 : f32 to vector<1x2048xf32>
    %160 = arith.mulf %159, %158 : vector<1x2048xf32>
    %161 = arith.addf %156, %160 : vector<1x2048xf32>
    %c2_68 = arith.constant 2 : index
    %c4_69 = arith.constant 4 : index
    %162 = memref.load %arg3[%c2_68, %c4_69] : memref<3x6xf32, #tpu.memory_space<smem>>
    %163 = vector.broadcast %162 : f32 to vector<1x2048xf32>
    %164 = arith.mulf %163, %39 : vector<1x2048xf32>
    %165 = arith.addf %161, %164 : vector<1x2048xf32>
    %c2_70 = arith.constant 2 : index
    %c5_71 = arith.constant 5 : index
    %166 = memref.load %arg3[%c2_70, %c5_71] : memref<3x6xf32, #tpu.memory_space<smem>>
    %167 = vector.broadcast %166 : f32 to vector<1x2048xf32>
    %168 = arith.mulf %167, %86 : vector<1x2048xf32>
    %169 = arith.addf %165, %168 : vector<1x2048xf32>
    %c2_72 = arith.constant 2 : index
    %c0_73 = arith.constant 0 : index
    %170 = vector.load %arg5[%c2_72, %c0_73] : memref<3x2048xf32, #tpu.memory_space<vmem>>, vector<1x2048xf32>
    tpu.vector_store %arg5[%c2_72, %c0_73], %169 {strides = array<i32>} : memref<3x2048xf32, #tpu.memory_space<vmem>>, vector<1x2048xf32>,
    return
  }
  func.func @transform_0(%arg0: i32) -> (i32, i32) {
    %c0_i32 = arith.constant 0 : i32
    %c0_i32_0 = arith.constant 0 : i32
    %c0_i32_1 = arith.constant 0 : i32
    return %c0_i32, %c0_i32_0 : i32, i32
  }
  func.func @transform_1(%arg0: i32) -> (i32, i32) {
    %c0_i32 = arith.constant 0 : i32
    %c0_i32_0 = arith.constant 0 : i32
    %c0_i32_1 = arith.constant 0 : i32
    return %c0_i32, %c0_i32_0 : i32, i32
  }
  func.func @transform_2(%arg0: i32) -> (i32, i32) {
    %c0_i32 = arith.constant 0 : i32
    %c0_i32_0 = arith.constant 0 : i32
    %c0_i32_1 = arith.constant 0 : i32
    return %c0_i32, %c0_i32_0 : i32, i32
  }
  func.func @transform_3(%arg0: i32) -> (i32, i32) {
    %c0_i32 = arith.constant 0 : i32
    %c0_i32_0 = arith.constant 0 : i32
    return %c0_i32, %arg0 : i32, i32
  }
  func.func @transform_4(%arg0: i32) -> (i32, i32) {
    %c0_i32 = arith.constant 0 : i32
    %c0_i32_0 = arith.constant 0 : i32
    return %c0_i32, %arg0 : i32, i32
  }
}

</mosaic_0001>

<bundles_post_ra>
// kernel: tpu_custom_call.1
= control target key start
LH: loop header
LB: loop body
LE: loop exit
PB: predicated region body
PF: predicated region fallthrough
CT: control target
= control target key end

     0   :  { %9 = vsyncpa [#allocation5], 0  ;;  %s3229_s0 = inlined_call_operand.hbm [shape: f32[2,4], index: 0, kind: input, shape index: {}]   ;;  %s3230_s1 = inlined_call_operand.hbm [shape: f32[2,5], index: 1, kind: input, shape index: {}]   ;;  %s3231_s2 = inlined_call_operand.hbm [shape: f32[3,6], index: 2, kind: input, shape index: {}]   ;;  %s3232_s3 = inlined_call_operand.hbm [shape: f32[4,8192], index: 3, kind: input, shape index: {}]   ;;  %s3233_s4 = inlined_call_operand.hbm [shape: f32[3,8192], index: 4, kind: output, shape index: {}]  }
   0x1   :  { %10 = vsyncpa [#allocation7], 0 }
   0x2   :  { %11 = vsyncpa [#allocation3], 0 }
   0x3   :  { %13 = vsyncpa [#allocation3 + $0x1], 0 }
   0x4   :  { %14 = vsyncpa [#allocation4], 0 }
   0x5   :  { %16 = vsyncpa [#allocation4 + $0x1], 0  ;;  %s2444_s15 = smov 0   ;;  %s2446_s16 = smov 0  }
   0x6   :  { %s2448_s17 = smov 0   ;;  %s2450_s18 = smov 0  }
   0x7 LB: > { %s2465_s19 = sadd.s32 4294967295, %s2411_s18   ;;  %s1964_s20 = sadd.s32 4294967294, %s2411_s18   ;;  %s2411_s18 = sphi %s2450_s18, %s3254_s18   ;;  %s2407_s17 = sphi %s2448_s17, %s3253_s17   ;;  %s2403_s16 = sphi %s2446_s16, %s3252_s16   ;;  %s2399_s15 = sphi %s2444_s15, %s3251_s15  }
   0x8   : > { %p105_p0 = scmp.ne.s32.totalorder %s2403_s16, %s2399_s15  ;;  %p3234_p1 = scmp.eq.s32.totalorder %s2465_s19, 0 }
   0x9   : > { %p129_p2 = scmp.eq.s32.totalorder %s2465_s19, 3  ;;  %p135_p3 = scmp.eq.s32.totalorder %s1964_s20, 3 }
   0xa   : > { %p2474_p4 = por %p3234_p1, %p105_p0  ;;  %p1965_p5 = scmp.ge.s32.totalorder %s2411_s18, 1 }
   0xb   : > { %p2479_p6 = por %p135_p3, %p105_p0  ;;  %p142_p7 = scmp.lt.s32.totalorder %s2411_s18, 5 }
   0xc   : > { %s3238_s21 = scalar_select %p2474_p4, 1, 0 }
   0xd   : > { %s3239_s22 = scalar_select %p2479_p6, 1, 0 }
   0xe   : > { %p2484_p8 = pnand %p1965_p5, %p142_p7  ;;  %s2491_s24 = sadd.s32 1, %s2411_s18  }
   0xf   : > { %s89_s25 = ssub.s32 %s2411_s18, %s2491_s24  ;;  %s92_s26 = sadd.s32 1, %s2407_s17 }
  0x10   : > { %s3240_s23 = scalar_select %p2484_p8, 1, 0 }
  0x11   : > { %p2208_p9 = pneg %p2484_p8  ;;  %p90_p11 = scmp.eq.s32.totalorder %s89_s25, 0 }
  0x12   : > { %p99_p12 = scmp.ne.s32.totalorder %s2407_s17, %s2403_s16  ;;  %s2413_s27 = smov [#allocation6]  }
  0x13   : > { %p2209_p10 = pnand %p2208_p9, %p3234_p1  ;;  %s2414_s30 = smov [#allocation2]  }
  0x14   : > { %s2415_s7 = smov [#allocation8]   ;;  %p100_p13 = scmp.eq.s32.totalorder %s2411_s18, 0 }
  0x15   : > { %2214 = dma.hbm_to_smem (!%p2209_p10), %s3230_s1, 32, %s2413_s27, [#allocation7]  }
  0x16   : > { %2211 = dma.hbm_to_smem (!%p2209_p10), %s3229_s0, 32, %s2414_s30, [#allocation5]  }
  0x17   : > { %2217 = dma.hbm_to_smem (!%p2209_p10), %s3231_s2, 64, %s2415_s7, [#allocation7]  }
  0x18   : > { %s2510_s10 = scalar_select %p90_p11, %s2407_s17, %s92_s26  }
  0x19   : > { %p2515_p0 = por %p129_p2, %p99_p12  ;;  %p2229_p3 = scmp.lt.s32.totalorder %s2411_s18, 4 }
  0x1a   : > { %s182_s12 = sand.u32 1, %s2407_s17   ;;  %p101_p5 = por %p100_p13, %p99_p12 }
  0x1b   : > { %s3241_s11 = scalar_select %p2515_p0, 1, 0 }
  0x1c   : > { %s1970_s13 = sshll.u32 %s182_s12, 6  ;;  %s2190_s14 = sshll.u32 %s2411_s18, 10 }
  0x1d   : > { %s2525_s27 = scalar_lea.hbm %s3232_s3, %s2190_s14  ;;  %s186_s26 = scalar_lea.vmem [#allocation9], %s1970_s13 }
  0x1e   : > { %s194_s28 = sshll.u32 %s186_s26, 4  ;;  %p2527_p7 = pnand %p2229_p3, %p101_p5  ;;  %s195_s28 = int_to_ptr.vmem [resolvable:$true] %s194_s28 }
  0x1f   : > { %s183_s30 = scalar_lea.sflag [#allocation3], %s182_s12  ;;  %s2311_s5 = scalar_lea.hbm %s2525_s27, 1024 }
  0x20   : > { %p2312_p2 = scmp.ne.s32.totalorder %s2525_s27, %s2311_s5  ;;  %p2313_p9 = pneg %p2527_p7 }
  0x21   : > { %s2316_s8 = scalar_lea.hbm %s3232_s3, 4096  ;;  %p2317_p12 = scmp.lt.s32.totalorder %s2525_s27, %s3232_s3 }
  0x22   : > { %p2314_p10 = pnand %p2313_p9, %p2312_p2  ;;  %p2318_p13 = scmp.lt.s32.totalorder %s2316_s8, %s2311_s5 }
  0x24   : > { %p2315_p11 = pneg %p2314_p10  ;;  %p2319_p3 = por %p2318_p13, %p2317_p12 }
  0x26   : > { %p2320_p5 = pnand %p2319_p3, %p2315_p11 }
  0x28   : > { %2323 = shalt.err (!%p2320_p5)
}
  0x29   : > { %s2324_s14 = scalar_lea.vmem %s195_s28, 1024  ;;  %s2416_s12 = smov [#allocation9]  }
  0x2a   : > { %p2325_p1 = scmp.ne.s32.totalorder %s195_s28, %s2324_s14  ;;  %s2329_s20 = sshll.u32 %s2416_s12, 4  ;;  %s2330_s20 = int_to_ptr.vmem [resolvable:$false] %s2329_s20 }
  0x2b   : > { %s2331_s25 = scalar_lea.vmem %s2330_s20, 2048  ;;  %p2332_p2 = scmp.lt.s32.totalorder %s195_s28, %s2330_s20 }
  0x2c   : > { %p2327_p6 = pnand %p2325_p1, %p2313_p9  ;;  %p2333_p10 = scmp.lt.s32.totalorder %s2331_s25, %s2324_s14 }
  0x2e   : > { %p2328_p0 = pneg %p2327_p6  ;;  %p2334_p4 = por %p2333_p10, %p2332_p2 }
  0x30   : > { %p2335_p8 = pnand %p2334_p4, %p2328_p0 }
  0x32   : > { %2338 = shalt.err (!%p2335_p8)
}
  0x33   : > { %2221 = dma.hbm_to_vmem [thread:$0]  (!%p2527_p7), %s2525_s27, 1024, %s195_s28, %s183_s30  }
  0x34   : > { %p3243_p11 = scmp.ne.s32.totalorder %s3240_s23, 0 }
  0x35   : > { %p3244_p12 = scmp.eq.s32.totalorder (!%p3243_p11), %s2465_s19, 0 }
  0x36   : > { %203 = sbr.rel (%p3243_p11) target bundleno = 293 (0x125), region = 36 }
  0x3b   : > { %2382 = dma.done.wait (%p3244_p12), [#allocation5], 32   ;;  %p3245_p1 = pmov %p3244_p12 }
  0x3d   : > { %2384 = vsyncadd (%p3245_p1), [#allocation5], 4294967264  ;;  %p3246_p6 = pmov %p3245_p1 }
  0x3e   : > { %p3247_p9 = pmov %p3245_p1 }
  0x3f   : > { %2386 = dma.done.wait (%p3246_p6), [#allocation7], 96  }
  0x40   : > { %2388 = vsyncadd (%p3247_p9), [#allocation7], 4294967200  ;;  %s2556_s26 = sand.u32 1, %s2403_s16   ;;  %p3248_p4 = scmp.ne.s32.totalorder %s3238_s21, 0 }
  0x41   : > { %s1977_s23 = sshll.u32 %s2556_s26, 6  ;;  %s218_s27 = scalar_lea.sflag [#allocation3], %s2556_s26 }
  0x42   : > { %s2562_s28 = scalar_lea.vmem [#allocation9], %s1977_s23 }
  0x43   : > { %2390 = dma.done.wait (%p3248_p4), %s218_s27, 1024  }
  0x44   : > { %2392 = vsyncadd (%p3248_p4), %s218_s27, 4294966272 }
  0x45   : > { %226 = sfence }
  0x46   : > { %s257_s29 = sld [smem:[#allocation2]]  ;;  %v1156_v0 = vlaneseq  ;;  %v2417_v1 = vmov 1966171168   ;;  %v2569_v3 = vld [vmem:[%s2562_s28] sm:$0xff]  ;;  %v2572_v4 = vld [vmem:[%s2562_s28 + $0x8] sm:$0xff]  ;;  %v2575_v7 = vld [vmem:[%s2562_s28 + $0x10] sm:$0xff] }
  0x47   : > { %s1979_s30 = sld [smem:[#allocation2 + $0x1]]  ;;  %v1154_v2 = vunpack.c.l.s4 %v2417_v1  ;;  %v2578_v8 = vld [vmem:[%s2562_s28 + $0x18] sm:$0xff]  ;;  %v2581_v9 = vld [vmem:[%s2562_s28 + $0x20] sm:$0xff]  ;;  %v2584_v11 = vld [vmem:[%s2562_s28 + $0x28] sm:$0xff]  ;;  %p3249_p0 = scmp.ne.s32.totalorder %s3241_s11, 0 }
  0x48   : > { %s1988_s5 = sld [smem:[#allocation2 + $0x2]]  ;;  %v1157_v6 = vshrl.u32 %v1156_v0, 7  ;;  %v2587_v12 = vld [vmem:[%s2562_s28 + $0x30] sm:$0xff]  ;;  %v2590_v13 = vld [vmem:[%s2562_s28 + $0x38] sm:$0xff] }
  0x49   : > { %s1997_s6 = sld [smem:[#allocation2 + $0x3]]  ;;  %v1155_v5 = vunpack.c.0.s8 %v1154_v2 }
  0x4a   : > { %s2618_s21 = sld [smem:[#allocation2 + $0x80]] }
  0x4b   : > { %v2600_v25 = vsub.s32 %v1155_v5, %v1157_v6  ;;  %s2620_s7 = sld [smem:[#allocation2 + $0x81]] }
  0x4c   : > { %v258_v10 = vstv %s257_s29  ;;  %s2622_s8 = sld [smem:[#allocation2 + $0x82]] }
  0x4d   : > { %v259_v14 = vmul.f32 %v258_v10, %v2569_v3  ;;  %v260_v15 = vmul.f32 %v258_v10, %v2572_v4  ;;  %v261_v16 = vmul.f32 %v258_v10, %v2575_v7  ;;  %v262_v17 = vmul.f32 %v258_v10, %v2578_v8  ;;  %s2624_s9 = sld [smem:[#allocation2 + $0x83]] }
  0x4e   : > { %v263_v18 = vmul.f32 %v258_v10, %v2581_v9  ;;  %v264_v19 = vmul.f32 %v258_v10, %v2584_v11  ;;  %v265_v20 = vmul.f32 %v258_v10, %v2587_v12  ;;  %v266_v21 = vmul.f32 %v258_v10, %v2590_v13  ;;  %s2680_s13 = sld [smem:[#allocation6]] }
  0x4f   : > { %v268_v22 = vstv %s1979_s30  ;;  %v318_v23 = vstv %s1988_s5  ;;  %v368_v24 = vstv %s1997_s6  ;;  %s2682_s14 = sld [smem:[#allocation6 + $0x1]] }
  0x50   : > { %v269_v26 = vmul.f32 %v268_v22, %v2569_v3  ;;  %v270_v27 = vmul.f32 %v268_v22, %v2572_v4  ;;  %v271_v28 = vmul.f32 %v268_v22, %v2575_v7  ;;  %v272_v29 = vmul.f32 %v268_v22, %v2578_v8  ;;  %s2684_s12 = sld [smem:[#allocation6 + $0x2]] }
  0x51   : > { %v273_v30 = vmul.f32 %v268_v22, %v2581_v9  ;;  %v274_v31 = vmul.f32 %v268_v22, %v2584_v11  ;;  %v275_v32 = vmul.f32 %v268_v22, %v2587_v12  ;;  %v276_v33 = vmul.f32 %v268_v22, %v2590_v13  ;;  %s2694_s20 = sld [smem:[#allocation6 + $0x3]] }
  0x52   : > { %v1980_v34 = vrot.slane %v269_v26, 9  ;;  %v1981_v35 = vrot.slane %v270_v27, 9  ;;  %v1982_v36 = vrot.slane %v271_v28, 9  ;;  %v1983_v37 = vrot.slane %v272_v29, 9  ;;  %s2758_s25 = sld [smem:[#allocation6 + $0x4]] }
  0x53   : > { %v1984_v38 = vrot.slane %v273_v30, 9  ;;  %v1985_v39 = vrot.slane %v274_v31, 9  ;;  %v1986_v40 = vrot.slane %v275_v32, 9  ;;  %v1987_v41 = vrot.slane %v276_v33, 9  ;;  %s2760_s27 = sld [smem:[#allocation6 + $0x80]] }
  0x54   : > { %v309_v42 = vadd.f32 %v1980_v34, %v259_v14  ;;  %v310_v43 = vadd.f32 %v1981_v35, %v260_v15  ;;  %v311_v44 = vadd.f32 %v1982_v36, %v261_v16  ;;  %v312_v45 = vadd.f32 %v1983_v37, %v262_v17  ;;  %s2762_s29 = sld [smem:[#allocation6 + $0x81]] }
  0x55   : > { %v313_v46 = vadd.f32 %v1984_v38, %v263_v18  ;;  %v314_v47 = vadd.f32 %v1985_v39, %v264_v19  ;;  %v315_v48 = vadd.f32 %v1986_v40, %v265_v20  ;;  %v316_v49 = vadd.f32 %v1987_v41, %v266_v21  ;;  %s2764_s30 = sld [smem:[#allocation6 + $0x82]] }
  0x56   : > { %v319_v50 = vmul.f32 %v318_v23, %v2569_v3  ;;  %v320_v51 = vmul.f32 %v318_v23, %v2572_v4  ;;  %v321_v52 = vmul.f32 %v318_v23, %v2575_v7  ;;  %v322_v53 = vmul.f32 %v318_v23, %v2578_v8  ;;  %s2826_s5 = sld [smem:[#allocation6 + $0x83]] }
  0x57   : > { %v323_v54 = vmul.f32 %v318_v23, %v2581_v9  ;;  %v324_v55 = vmul.f32 %v318_v23, %v2584_v11  ;;  %v325_v56 = vmul.f32 %v318_v23, %v2587_v12  ;;  %v326_v57 = vmul.f32 %v318_v23, %v2590_v13  ;;  %s2828_s6 = sld [smem:[#allocation6 + $0x84]] }
  0x58   : > { %v1989_v58 = vrot.slane %v319_v50, 10  ;;  %v1990_v59 = vrot.slane %v320_v51, 10  ;;  %v1991_v60 = vrot.slane %v321_v52, 10  ;;  %v1992_v61 = vrot.slane %v322_v53, 10 }
  0x59   : > { %v1993_v62 = vrot.slane %v323_v54, 10  ;;  %v1994_v63 = vrot.slane %v324_v55, 10  ;;  %v1995_v0 = vrot.slane %v325_v56, 10  ;;  %v1996_v1 = vrot.slane %v326_v57, 10 }
  0x5a   : > { %v359_v2 = vadd.f32 %v1989_v58, %v309_v42  ;;  %v360_v5 = vadd.f32 %v1990_v59, %v310_v43  ;;  %v361_v6 = vadd.f32 %v1991_v60, %v311_v44  ;;  %v362_v10 = vadd.f32 %v1992_v61, %v312_v45 }
  0x5b   : > { %v363_v14 = vadd.f32 %v1993_v62, %v313_v46  ;;  %v364_v15 = vadd.f32 %v1994_v63, %v314_v47  ;;  %v365_v16 = vadd.f32 %v1995_v0, %v315_v48  ;;  %v366_v17 = vadd.f32 %v1996_v1, %v316_v49 }
  0x5c   : > { %v369_v18 = vmul.f32 %v368_v24, %v2569_v3  ;;  %v370_v19 = vmul.f32 %v368_v24, %v2572_v4  ;;  %v371_v20 = vmul.f32 %v368_v24, %v2575_v7  ;;  %v372_v21 = vmul.f32 %v368_v24, %v2578_v8 }
  0x5d   : > { %v373_v22 = vmul.f32 %v368_v24, %v2581_v9  ;;  %v374_v23 = vmul.f32 %v368_v24, %v2584_v11  ;;  %v375_v26 = vmul.f32 %v368_v24, %v2587_v12  ;;  %v376_v27 = vmul.f32 %v368_v24, %v2590_v13 }
  0x5e   : > { %v1998_v28 = vrot.slane %v369_v18, 11  ;;  %v1999_v29 = vrot.slane %v370_v19, 11  ;;  %v2000_v30 = vrot.slane %v371_v20, 11  ;;  %v2001_v31 = vrot.slane %v372_v21, 11 }
  0x5f   : > { %v2002_v32 = vrot.slane %v373_v22, 11  ;;  %v2003_v33 = vrot.slane %v374_v23, 11  ;;  %v2004_v34 = vrot.slane %v375_v26, 11  ;;  %v2005_v35 = vrot.slane %v376_v27, 11 }
  0x60   : > { %v2634_v36 = vadd.f32 %v1998_v28, %v359_v2  ;;  %v2636_v37 = vadd.f32 %v1999_v29, %v360_v5  ;;  %v2638_v38 = vadd.f32 %v2000_v30, %v361_v6  ;;  %v2640_v39 = vadd.f32 %v2001_v31, %v362_v10 }
  0x61   : > { %v2642_v24 = vadd.f32 %v2002_v32, %v363_v14  ;;  %v2644_v40 = vadd.f32 %v2003_v33, %v364_v15  ;;  %v2646_v41 = vadd.f32 %v2004_v34, %v365_v16  ;;  %v2648_v42 = vadd.f32 %v2005_v35, %v366_v17 }
  0x62   : > { %v418_v43 = vstv %s2618_s21  ;;  %v428_v44 = vstv %s2620_s7  ;;  %v478_v45 = vstv %s2622_s8  ;;  %v2654_v46 = vstv %s2624_s9  ;;  %s2830_s21 = sld [smem:[#allocation8]] }
  0x63   : > { %v419_v47 = vmul.f32 %v418_v43, %v2569_v3  ;;  %v420_v48 = vmul.f32 %v418_v43, %v2572_v4  ;;  %v421_v49 = vmul.f32 %v418_v43, %v2575_v7  ;;  %v422_v50 = vmul.f32 %v418_v43, %v2578_v8  ;;  %s2832_s7 = sld [smem:[#allocation8 + $0x1]] }
  0x64   : > { %v423_v51 = vmul.f32 %v418_v43, %v2581_v9  ;;  %v424_v52 = vmul.f32 %v418_v43, %v2584_v11  ;;  %v425_v53 = vmul.f32 %v418_v43, %v2587_v12  ;;  %v426_v54 = vmul.f32 %v418_v43, %v2590_v13  ;;  %s2864_s8 = sld [smem:[#allocation8 + $0x2]] }
  0x65   : > { %v429_v55 = vmul.f32 %v428_v44, %v2569_v3  ;;  %v430_v56 = vmul.f32 %v428_v44, %v2572_v4  ;;  %v431_v57 = vmul.f32 %v428_v44, %v2575_v7  ;;  %v432_v58 = vmul.f32 %v428_v44, %v2578_v8  ;;  %s2878_s9 = sld [smem:[#allocation8 + $0x3]] }
  0x66   : > { %v433_v59 = vmul.f32 %v428_v44, %v2581_v9  ;;  %v434_v60 = vmul.f32 %v428_v44, %v2584_v11  ;;  %v435_v61 = vmul.f32 %v428_v44, %v2587_v12  ;;  %v436_v62 = vmul.f32 %v428_v44, %v2590_v13 }
  0x67   : > { %v2008_v63 = vrot.slane %v429_v55, 9  ;;  %v2009_v0 = vrot.slane %v430_v56, 9  ;;  %v2010_v1 = vrot.slane %v431_v57, 9  ;;  %v2011_v2 = vrot.slane %v432_v58, 9 }
  0x68   : > { %v2012_v5 = vrot.slane %v433_v59, 9  ;;  %v2013_v6 = vrot.slane %v434_v60, 9  ;;  %v2014_v10 = vrot.slane %v435_v61, 9  ;;  %v2015_v14 = vrot.slane %v436_v62, 9 }
  0x69   : > { %v469_v15 = vadd.f32 %v2008_v63, %v419_v47  ;;  %v470_v16 = vadd.f32 %v2009_v0, %v420_v48  ;;  %v471_v17 = vadd.f32 %v2010_v1, %v421_v49  ;;  %v472_v18 = vadd.f32 %v2011_v2, %v422_v50 }
  0x6a   : > { %v473_v19 = vadd.f32 %v2012_v5, %v423_v51  ;;  %v474_v20 = vadd.f32 %v2013_v6, %v424_v52  ;;  %v475_v21 = vadd.f32 %v2014_v10, %v425_v53  ;;  %v476_v22 = vadd.f32 %v2015_v14, %v426_v54 }
  0x6b   : > { %v479_v23 = vmul.f32 %v478_v45, %v2569_v3  ;;  %v480_v26 = vmul.f32 %v478_v45, %v2572_v4  ;;  %v481_v27 = vmul.f32 %v478_v45, %v2575_v7  ;;  %v482_v28 = vmul.f32 %v478_v45, %v2578_v8 }
  0x6c   : > { %v483_v29 = vmul.f32 %v478_v45, %v2581_v9  ;;  %v484_v30 = vmul.f32 %v478_v45, %v2584_v11  ;;  %v485_v31 = vmul.f32 %v478_v45, %v2587_v12  ;;  %v486_v32 = vmul.f32 %v478_v45, %v2590_v13 }
  0x6d   : > { %v2017_v33 = vrot.slane %v479_v23, 10  ;;  %v2018_v34 = vrot.slane %v480_v26, 10  ;;  %v2019_v35 = vrot.slane %v481_v27, 10  ;;  %v2020_v43 = vrot.slane %v482_v28, 10 }
  0x6e   : > { %v2021_v44 = vrot.slane %v483_v29, 10  ;;  %v2022_v47 = vrot.slane %v484_v30, 10  ;;  %v2023_v48 = vrot.slane %v485_v31, 10  ;;  %v2024_v49 = vrot.slane %v486_v32, 10 }
  0x6f   : > { %v519_v50 = vadd.f32 %v2017_v33, %v469_v15  ;;  %v520_v51 = vadd.f32 %v2018_v34, %v470_v16  ;;  %v521_v52 = vadd.f32 %v2019_v35, %v471_v17  ;;  %v522_v53 = vadd.f32 %v2020_v43, %v472_v18 }
  0x70   : > { %v523_v54 = vadd.f32 %v2021_v44, %v473_v19  ;;  %v524_v55 = vadd.f32 %v2022_v47, %v474_v20  ;;  %v525_v56 = vadd.f32 %v2023_v48, %v475_v21  ;;  %v526_v45 = vadd.f32 %v2024_v49, %v476_v22 }
  0x71   : > { %v529_v57 = vmul.f32 %v2654_v46, %v2569_v3  ;;  %v530_v58 = vmul.f32 %v2654_v46, %v2572_v4  ;;  %v531_v59 = vmul.f32 %v2654_v46, %v2575_v7  ;;  %v532_v60 = vmul.f32 %v2654_v46, %v2578_v8 }
  0x72   : > { %v533_v61 = vmul.f32 %v2654_v46, %v2581_v9  ;;  %v534_v62 = vmul.f32 %v2654_v46, %v2584_v11  ;;  %v535_v63 = vmul.f32 %v2654_v46, %v2587_v12  ;;  %v536_v0 = vmul.f32 %v2654_v46, %v2590_v13 }
  0x73   : > { %v2026_v1 = vrot.slane %v529_v57, 11  ;;  %v2027_v2 = vrot.slane %v530_v58, 11  ;;  %v2028_v5 = vrot.slane %v531_v59, 11  ;;  %v2029_v6 = vrot.slane %v532_v60, 11 }
  0x74   : > { %v2030_v10 = vrot.slane %v533_v61, 11  ;;  %v2031_v14 = vrot.slane %v534_v62, 11  ;;  %v2032_v15 = vrot.slane %v535_v63, 11  ;;  %v2033_v16 = vrot.slane %v536_v0, 11 }
  0x75   : > { %v569_v17 = vadd.f32 %v2026_v1, %v519_v50  ;;  %v570_v18 = vadd.f32 %v2027_v2, %v520_v51  ;;  %v571_v19 = vadd.f32 %v2028_v5, %v521_v52  ;;  %v572_v20 = vadd.f32 %v2029_v6, %v522_v53 }
  0x76   : > { %v573_v21 = vadd.f32 %v2030_v10, %v523_v54  ;;  %v574_v22 = vadd.f32 %v2031_v14, %v524_v55  ;;  %v575_v23 = vadd.f32 %v2032_v15, %v525_v56  ;;  %v576_v46 = vadd.f32 %v2033_v16, %v526_v45 }
  0x77   : > { %v2705_v26 = vmul.f32 %v569_v17, %v2634_v36  ;;  %v2708_v27 = vmul.f32 %v570_v18, %v2636_v37  ;;  %v2711_v28 = vmul.f32 %v571_v19, %v2638_v38  ;;  %v2714_v29 = vmul.f32 %v572_v20, %v2640_v39 }
  0x78   : > { %v2717_v30 = vmul.f32 %v573_v21, %v2642_v24  ;;  %v2720_v31 = vmul.f32 %v574_v22, %v2644_v40  ;;  %v2723_v32 = vmul.f32 %v575_v23, %v2646_v41  ;;  %v2726_v36 = vmul.f32 %v576_v46, %v2648_v42 }
  0x79   : > { %v586_v37 = vstv %s2680_s13  ;;  %v596_v33 = vstv %s2682_s14  ;;  %v646_v34 = vstv %s2684_s12  ;;  %v2732_v38 = vstv %s2694_s20  ;;  %s2892_s13 = sld [smem:[#allocation8 + $0x4]] }
  0x7a   : > { %v587_v39 = vmul.f32 %v586_v37, %v2569_v3  ;;  %v588_v35 = vmul.f32 %v586_v37, %v2572_v4  ;;  %v589_v24 = vmul.f32 %v586_v37, %v2575_v7  ;;  %v590_v40 = vmul.f32 %v586_v37, %v2578_v8  ;;  %s2898_s14 = sld [smem:[#allocation8 + $0x5]] }
  0x7b   : > { %v591_v43 = vmul.f32 %v586_v37, %v2581_v9  ;;  %v592_v41 = vmul.f32 %v586_v37, %v2584_v11  ;;  %v593_v42 = vmul.f32 %v586_v37, %v2587_v12  ;;  %v594_v44 = vmul.f32 %v586_v37, %v2590_v13  ;;  %s2950_s12 = sld [smem:[#allocation8 + $0x80]] }
  0x7c   : > { %v597_v47 = vmul.f32 %v596_v33, %v2569_v3  ;;  %v598_v48 = vmul.f32 %v596_v33, %v2572_v4  ;;  %v599_v49 = vmul.f32 %v596_v33, %v2575_v7  ;;  %v600_v50 = vmul.f32 %v596_v33, %v2578_v8  ;;  %s2952_s20 = sld [smem:[#allocation8 + $0x81]] }
  0x7d   : > { %v601_v51 = vmul.f32 %v596_v33, %v2581_v9  ;;  %v602_v52 = vmul.f32 %v596_v33, %v2584_v11  ;;  %v603_v53 = vmul.f32 %v596_v33, %v2587_v12  ;;  %v604_v54 = vmul.f32 %v596_v33, %v2590_v13 }
  0x7e   : > { %v2035_v55 = vrot.slane %v597_v47, 9  ;;  %v2036_v56 = vrot.slane %v598_v48, 9  ;;  %v2037_v45 = vrot.slane %v599_v49, 9  ;;  %v2038_v57 = vrot.slane %v600_v50, 9 }
  0x7f   : > { %v2039_v58 = vrot.slane %v601_v51, 9  ;;  %v2040_v59 = vrot.slane %v602_v52, 9  ;;  %v2041_v60 = vrot.slane %v603_v53, 9  ;;  %v2042_v61 = vrot.slane %v604_v54, 9 }
  0x80   : > { %v637_v62 = vadd.f32 %v2035_v55, %v587_v39  ;;  %v638_v63 = vadd.f32 %v2036_v56, %v588_v35  ;;  %v639_v0 = vadd.f32 %v2037_v45, %v589_v24  ;;  %v640_v1 = vadd.f32 %v2038_v57, %v590_v40 }
  0x81   : > { %v641_v2 = vadd.f32 %v2039_v58, %v591_v43  ;;  %v642_v5 = vadd.f32 %v2040_v59, %v592_v41  ;;  %v643_v6 = vadd.f32 %v2041_v60, %v593_v42  ;;  %v644_v10 = vadd.f32 %v2042_v61, %v594_v44 }
  0x82   : > { %v647_v14 = vmul.f32 %v646_v34, %v2569_v3  ;;  %v648_v15 = vmul.f32 %v646_v34, %v2572_v4  ;;  %v649_v16 = vmul.f32 %v646_v34, %v2575_v7  ;;  %v650_v17 = vmul.f32 %v646_v34, %v2578_v8 }
  0x83   : > { %v651_v18 = vmul.f32 %v646_v34, %v2581_v9  ;;  %v652_v19 = vmul.f32 %v646_v34, %v2584_v11  ;;  %v653_v20 = vmul.f32 %v646_v34, %v2587_v12  ;;  %v654_v21 = vmul.f32 %v646_v34, %v2590_v13 }
  0x84   : > { %v2044_v22 = vrot.slane %v647_v14, 10  ;;  %v2045_v23 = vrot.slane %v648_v15, 10  ;;  %v2046_v46 = vrot.slane %v649_v16, 10  ;;  %v2047_v37 = vrot.slane %v650_v17, 10 }
  0x85   : > { %v2048_v33 = vrot.slane %v651_v18, 10  ;;  %v2049_v39 = vrot.slane %v652_v19, 10  ;;  %v2050_v35 = vrot.slane %v653_v20, 10  ;;  %v2051_v24 = vrot.slane %v654_v21, 10 }
  0x86   : > { %v687_v40 = vadd.f32 %v2044_v22, %v637_v62  ;;  %v688_v43 = vadd.f32 %v2045_v23, %v638_v63  ;;  %v689_v41 = vadd.f32 %v2046_v46, %v639_v0  ;;  %v690_v42 = vadd.f32 %v2047_v37, %v640_v1 }
  0x87   : > { %v691_v34 = vadd.f32 %v2048_v33, %v641_v2  ;;  %v692_v44 = vadd.f32 %v2049_v39, %v642_v5  ;;  %v693_v47 = vadd.f32 %v2050_v35, %v643_v6  ;;  %v694_v48 = vadd.f32 %v2051_v24, %v644_v10 }
  0x88   : > { %v697_v49 = vmul.f32 %v2732_v38, %v2569_v3  ;;  %v698_v50 = vmul.f32 %v2732_v38, %v2572_v4  ;;  %v699_v51 = vmul.f32 %v2732_v38, %v2575_v7  ;;  %v700_v52 = vmul.f32 %v2732_v38, %v2578_v8 }
  0x89   : > { %v701_v53 = vmul.f32 %v2732_v38, %v2581_v9  ;;  %v702_v54 = vmul.f32 %v2732_v38, %v2584_v11  ;;  %v703_v55 = vmul.f32 %v2732_v38, %v2587_v12  ;;  %v704_v56 = vmul.f32 %v2732_v38, %v2590_v13 }
  0x8a   : > { %v2053_v45 = vrot.slane %v697_v49, 11  ;;  %v2054_v57 = vrot.slane %v698_v50, 11  ;;  %v2055_v58 = vrot.slane %v699_v51, 11  ;;  %v2056_v59 = vrot.slane %v700_v52, 11 }
  0x8b   : > { %v2057_v60 = vrot.slane %v701_v53, 11  ;;  %v2058_v61 = vrot.slane %v702_v54, 11  ;;  %v2059_v62 = vrot.slane %v703_v55, 11  ;;  %v2060_v63 = vrot.slane %v704_v56, 11 }
  0x8c   : > { %v737_v0 = vadd.f32 %v2053_v45, %v687_v40  ;;  %v738_v1 = vadd.f32 %v2054_v57, %v688_v43  ;;  %v739_v2 = vadd.f32 %v2055_v58, %v689_v41  ;;  %v740_v5 = vadd.f32 %v2056_v59, %v690_v42 }
  0x8d   : > { %v741_v6 = vadd.f32 %v2057_v60, %v691_v34  ;;  %v742_v10 = vadd.f32 %v2058_v61, %v692_v44  ;;  %v743_v14 = vadd.f32 %v2059_v62, %v693_v47  ;;  %v744_v38 = vadd.f32 %v2060_v63, %v694_v48 }
  0x8e   : > { %v746_v15 = vstv %s2758_s25  ;;  %v764_v16 = vstv %s2760_s27  ;;  %v774_v17 = vstv %s2762_s29  ;;  %v824_v18 = vstv %s2764_s30  ;;  %s2980_s25 = sld [smem:[#allocation8 + $0x82]] }
  0x8f   : > { %v747_v19 = vmul.f32 %v746_v15, %v2705_v26  ;;  %v748_v20 = vmul.f32 %v746_v15, %v2708_v27  ;;  %v749_v21 = vmul.f32 %v746_v15, %v2711_v28  ;;  %v750_v22 = vmul.f32 %v746_v15, %v2714_v29  ;;  %s2990_s27 = sld [smem:[#allocation8 + $0x83]] }
  0x90   : > { %v751_v23 = vmul.f32 %v746_v15, %v2717_v30  ;;  %v752_v46 = vmul.f32 %v746_v15, %v2720_v31  ;;  %v753_v37 = vmul.f32 %v746_v15, %v2723_v32  ;;  %v754_v33 = vmul.f32 %v746_v15, %v2726_v36  ;;  %s3002_s29 = sld [smem:[#allocation8 + $0x84]] }
  0x91   : > { %v2794_v39 = vadd.f32 %v747_v19, %v737_v0  ;;  %v2796_v35 = vadd.f32 %v748_v20, %v738_v1  ;;  %v2798_v24 = vadd.f32 %v749_v21, %v739_v2  ;;  %v2800_v40 = vadd.f32 %v750_v22, %v740_v5  ;;  %s3014_s30 = sld [smem:[#allocation8 + $0x85]] }
  0x92   : > { %v2802_v43 = vadd.f32 %v751_v23, %v741_v6  ;;  %v2804_v41 = vadd.f32 %v752_v46, %v742_v10  ;;  %v2806_v42 = vadd.f32 %v753_v37, %v743_v14  ;;  %v2808_v34 = vadd.f32 %v754_v33, %v744_v38 }
  0x93   : > { %v765_v44 = vmul.f32 %v764_v16, %v2569_v3  ;;  %v766_v47 = vmul.f32 %v764_v16, %v2572_v4  ;;  %v767_v48 = vmul.f32 %v764_v16, %v2575_v7  ;;  %v768_v49 = vmul.f32 %v764_v16, %v2578_v8 }
  0x94   : > { %v769_v50 = vmul.f32 %v764_v16, %v2581_v9  ;;  %v770_v51 = vmul.f32 %v764_v16, %v2584_v11  ;;  %v771_v52 = vmul.f32 %v764_v16, %v2587_v12  ;;  %v772_v53 = vmul.f32 %v764_v16, %v2590_v13 }
  0x95   : > { %v775_v54 = vmul.f32 %v774_v17, %v2569_v3  ;;  %v776_v55 = vmul.f32 %v774_v17, %v2572_v4  ;;  %v777_v56 = vmul.f32 %v774_v17, %v2575_v7  ;;  %v778_v45 = vmul.f32 %v774_v17, %v2578_v8 }
  0x96   : > { %v779_v57 = vmul.f32 %v774_v17, %v2581_v9  ;;  %v780_v58 = vmul.f32 %v774_v17, %v2584_v11  ;;  %v781_v59 = vmul.f32 %v774_v17, %v2587_v12  ;;  %v782_v60 = vmul.f32 %v774_v17, %v2590_v13 }
  0x97   : > { %v2064_v61 = vrot.slane %v775_v54, 9  ;;  %v2065_v62 = vrot.slane %v776_v55, 9  ;;  %v2066_v63 = vrot.slane %v777_v56, 9  ;;  %v2067_v0 = vrot.slane %v778_v45, 9 }
  0x98   : > { %v2068_v1 = vrot.slane %v779_v57, 9  ;;  %v2069_v2 = vrot.slane %v780_v58, 9  ;;  %v2070_v5 = vrot.slane %v781_v59, 9  ;;  %v2071_v6 = vrot.slane %v782_v60, 9 }
  0x99   : > { %v815_v10 = vadd.f32 %v2064_v61, %v765_v44  ;;  %v816_v14 = vadd.f32 %v2065_v62, %v766_v47  ;;  %v817_v38 = vadd.f32 %v2066_v63, %v767_v48  ;;  %v818_v15 = vadd.f32 %v2067_v0, %v768_v49 }
  0x9a   : > { %v819_v16 = vadd.f32 %v2068_v1, %v769_v50  ;;  %v820_v17 = vadd.f32 %v2069_v2, %v770_v51  ;;  %v821_v19 = vadd.f32 %v2070_v5, %v771_v52  ;;  %v822_v20 = vadd.f32 %v2071_v6, %v772_v53 }
  0x9b   : > { %v825_v21 = vmul.f32 %v824_v18, %v2569_v3  ;;  %v826_v22 = vmul.f32 %v824_v18, %v2572_v4  ;;  %v827_v23 = vmul.f32 %v824_v18, %v2575_v7  ;;  %v828_v46 = vmul.f32 %v824_v18, %v2578_v8 }
  0x9c   : > { %v829_v37 = vmul.f32 %v824_v18, %v2581_v9  ;;  %v830_v33 = vmul.f32 %v824_v18, %v2584_v11  ;;  %v831_v44 = vmul.f32 %v824_v18, %v2587_v12  ;;  %v832_v47 = vmul.f32 %v824_v18, %v2590_v13 }
  0x9d   : > { %v2073_v48 = vrot.slane %v825_v21, 10  ;;  %v2074_v49 = vrot.slane %v826_v22, 10  ;;  %v2075_v50 = vrot.slane %v827_v23, 10  ;;  %v2076_v51 = vrot.slane %v828_v46, 10 }
  0x9e   : > { %v2077_v52 = vrot.slane %v829_v37, 10  ;;  %v2078_v53 = vrot.slane %v830_v33, 10  ;;  %v2079_v54 = vrot.slane %v831_v44, 10  ;;  %v2080_v55 = vrot.slane %v832_v47, 10 }
  0x9f   : > { %v865_v56 = vadd.f32 %v2073_v48, %v815_v10  ;;  %v866_v45 = vadd.f32 %v2074_v49, %v816_v14  ;;  %v867_v57 = vadd.f32 %v2075_v50, %v817_v38  ;;  %v868_v58 = vadd.f32 %v2076_v51, %v818_v15 }
  0xa0   : > { %v869_v59 = vadd.f32 %v2077_v52, %v819_v16  ;;  %v870_v60 = vadd.f32 %v2078_v53, %v820_v17  ;;  %v871_v61 = vadd.f32 %v2079_v54, %v821_v19  ;;  %v872_v18 = vadd.f32 %v2080_v55, %v822_v20 }
  0xa1   : > { %v874_v62 = vstv %s2826_s5  ;;  %v924_v63 = vstv %s2828_s6  ;;  %v950_v0 = vstv %s2830_s21  ;;  %v2846_v1 = vstv %s2832_s7  ;;  %s3030_s5 = scalar_lea.vmem [#allocation10], %s1977_s23  ;;  %s3068_s23 = sld [smem:[#allocation8 + $0x100]] }
  0xa2   : > { %v875_v2 = vmul.f32 %v874_v62, %v2569_v3  ;;  %v876_v5 = vmul.f32 %v874_v62, %v2572_v4  ;;  %v877_v6 = vmul.f32 %v874_v62, %v2575_v7  ;;  %v878_v10 = vmul.f32 %v874_v62, %v2578_v8  ;;  %s3098_s6 = sld [smem:[#allocation8 + $0x102]] }
  0xa3   : > { %v879_v14 = vmul.f32 %v874_v62, %v2581_v9  ;;  %v880_v38 = vmul.f32 %v874_v62, %v2584_v11  ;;  %v881_v15 = vmul.f32 %v874_v62, %v2587_v12  ;;  %v882_v16 = vmul.f32 %v874_v62, %v2590_v13  ;;  %s3102_s21 = sld [smem:[#allocation8 + $0x103]] }
  0xa4   : > { %v2082_v17 = vrot.slane %v875_v2, 11  ;;  %v2083_v19 = vrot.slane %v876_v5, 11  ;;  %v2084_v20 = vrot.slane %v877_v6, 11  ;;  %v2085_v21 = vrot.slane %v878_v10, 11  ;;  %s3108_s7 = sld [smem:[#allocation8 + $0x104]] }
  0xa5   : > { %v2086_v22 = vrot.slane %v879_v14, 11  ;;  %v2087_v23 = vrot.slane %v880_v38, 11  ;;  %v2088_v46 = vrot.slane %v881_v15, 11  ;;  %v2089_v37 = vrot.slane %v882_v16, 11 }
  0xa6   : > { %v915_v33 = vadd.f32 %v2082_v17, %v865_v56  ;;  %v916_v44 = vadd.f32 %v2083_v19, %v866_v45  ;;  %v917_v47 = vadd.f32 %v2084_v20, %v867_v57  ;;  %v918_v48 = vadd.f32 %v2085_v21, %v868_v58 }
  0xa7   : > { %v919_v49 = vadd.f32 %v2086_v22, %v869_v59  ;;  %v920_v50 = vadd.f32 %v2087_v23, %v870_v60  ;;  %v921_v51 = vadd.f32 %v2088_v46, %v871_v61  ;;  %v922_v52 = vadd.f32 %v2089_v37, %v872_v18 }
  0xa8   : > { %v925_v53 = vmul.f32 %v924_v63, %v2705_v26  ;;  %v926_v54 = vmul.f32 %v924_v63, %v2708_v27  ;;  %v927_v55 = vmul.f32 %v924_v63, %v2711_v28  ;;  %v928_v62 = vmul.f32 %v924_v63, %v2714_v29 }
  0xa9   : > { %v929_v2 = vmul.f32 %v924_v63, %v2717_v30  ;;  %v930_v5 = vmul.f32 %v924_v63, %v2720_v31  ;;  %v931_v56 = vmul.f32 %v924_v63, %v2723_v32  ;;  %v932_v45 = vmul.f32 %v924_v63, %v2726_v36 }
  0xaa   : > { %v933_v57 = vadd.f32 %v925_v53, %v915_v33  ;;  %v934_v58 = vadd.f32 %v926_v54, %v916_v44  ;;  %v935_v59 = vadd.f32 %v927_v55, %v917_v47  ;;  %v936_v60 = vadd.f32 %v928_v62, %v918_v48 }
  0xab   : > { %v937_v61 = vadd.f32 %v929_v2, %v919_v49  ;;  %v938_v18 = vadd.f32 %v930_v5, %v920_v50  ;;  %v939_v6 = vadd.f32 %v931_v56, %v921_v51  ;;  %v940_v10 = vadd.f32 %v932_v45, %v922_v52 }
  0xac   : > { %v2867_v14 = vmul.f32 %v933_v57, %v2794_v39  ;;  %v2870_v38 = vmul.f32 %v934_v58, %v2796_v35  ;;  %v2873_v15 = vmul.f32 %v935_v59, %v2798_v24  ;;  %v2876_v63 = vmul.f32 %v936_v60, %v2800_v40 }
  0xad   : > { %v2881_v16 = vmul.f32 %v937_v61, %v2802_v43  ;;  %v2884_v17 = vmul.f32 %v938_v18, %v2804_v41  ;;  %v2887_v39 = vmul.f32 %v939_v6, %v2806_v42  ;;  %v2890_v35 = vmul.f32 %v940_v10, %v2808_v34 }
  0xae   : > { %v951_v24 = vmul.f32 %v950_v0, %v2569_v3  ;;  %v952_v40 = vmul.f32 %v950_v0, %v2572_v4  ;;  %v953_v19 = vmul.f32 %v950_v0, %v2575_v7  ;;  %v954_v43 = vmul.f32 %v950_v0, %v2578_v8 }
  0xaf   : > { %v955_v41 = vmul.f32 %v950_v0, %v2581_v9  ;;  %v956_v42 = vmul.f32 %v950_v0, %v2584_v11  ;;  %v957_v20 = vmul.f32 %v950_v0, %v2587_v12  ;;  %v958_v34 = vmul.f32 %v950_v0, %v2590_v13 }
  0xb0   : > { %v961_v21 = vmul.f32 %v2846_v1, %v2569_v3  ;;  %v962_v22 = vmul.f32 %v2846_v1, %v2572_v4  ;;  %v963_v23 = vmul.f32 %v2846_v1, %v2575_v7  ;;  %v964_v46 = vmul.f32 %v2846_v1, %v2578_v8 }
  0xb1   : > { %v965_v37 = vmul.f32 %v2846_v1, %v2581_v9  ;;  %v966_v33 = vmul.f32 %v2846_v1, %v2584_v11  ;;  %v967_v0 = vmul.f32 %v2846_v1, %v2587_v12  ;;  %v968_v44 = vmul.f32 %v2846_v1, %v2590_v13 }
  0xb2   : > { %v2092_v47 = vrot.slane %v961_v21, 9  ;;  %v2093_v48 = vrot.slane %v962_v22, 9  ;;  %v2094_v49 = vrot.slane %v963_v23, 9  ;;  %v2095_v50 = vrot.slane %v964_v46, 9 }
  0xb3   : > { %v2096_v51 = vrot.slane %v965_v37, 9  ;;  %v2097_v52 = vrot.slane %v966_v33, 9  ;;  %v2098_v53 = vrot.slane %v967_v0, 9  ;;  %v2099_v54 = vrot.slane %v968_v44, 9 }
  0xb4   : > { %v1001_v55 = vadd.f32 %v2092_v47, %v951_v24  ;;  %v1002_v62 = vadd.f32 %v2093_v48, %v952_v40  ;;  %v1003_v2 = vadd.f32 %v2094_v49, %v953_v19  ;;  %v1004_v5 = vadd.f32 %v2095_v50, %v954_v43 }
  0xb5   : > { %v1005_v56 = vadd.f32 %v2096_v51, %v955_v41  ;;  %v1006_v45 = vadd.f32 %v2097_v52, %v956_v42  ;;  %v1007_v57 = vadd.f32 %v2098_v53, %v957_v20  ;;  %v1008_v1 = vadd.f32 %v2099_v54, %v958_v34 }
  0xb6   : > { %v1010_v58 = vstv %s2864_s8  ;;  %v1060_v59 = vstv %s2878_s9  ;;  %v1110_v60 = vstv %s2892_s13  ;;  %v2924_v61 = vstv %s2898_s14  ;;  %s3114_s8 = sld [smem:[#allocation8 + $0x105]]  ;;  %s2191_s9 = sshll.u32 %s2465_s19, 10 }
  0xb7   : > { %v1011_v18 = vmul.f32 %v1010_v58, %v2569_v3  ;;  %v1012_v6 = vmul.f32 %v1010_v58, %v2572_v4  ;;  %v1013_v10 = vmul.f32 %v1010_v58, %v2575_v7  ;;  %v1014_v24 = vmul.f32 %v1010_v58, %v2578_v8  ;;  %s1863_s13 = sshll.u32 %s3030_s5, 4  ;;  %s2418_s19 = smov [#allocation10]   ;;  %s1864_s13 = int_to_ptr.vmem [resolvable:$true] %s1863_s13 }
  0xb8   : > { %v1015_v40 = vmul.f32 %v1010_v58, %v2581_v9  ;;  %v1016_v19 = vmul.f32 %v1010_v58, %v2584_v11  ;;  %v1017_v43 = vmul.f32 %v1010_v58, %v2587_v12  ;;  %v1018_v41 = vmul.f32 %v1010_v58, %v2590_v13 }
  0xb9   : > { %v2101_v42 = vrot.slane %v1011_v18, 10  ;;  %v2102_v20 = vrot.slane %v1012_v6, 10  ;;  %v2103_v34 = vrot.slane %v1013_v10, 10  ;;  %v2104_v21 = vrot.slane %v1014_v24, 10 }
  0xba   : > { %v2105_v22 = vrot.slane %v1015_v40, 10  ;;  %v2106_v23 = vrot.slane %v1016_v19, 10  ;;  %v2107_v46 = vrot.slane %v1017_v43, 10  ;;  %v2108_v37 = vrot.slane %v1018_v41, 10 }
  0xbb   : > { %v1051_v33 = vadd.f32 %v2101_v42, %v1001_v55  ;;  %v1052_v0 = vadd.f32 %v2102_v20, %v1002_v62  ;;  %v1053_v44 = vadd.f32 %v2103_v34, %v1003_v2  ;;  %v1054_v47 = vadd.f32 %v2104_v21, %v1004_v5 }
  0xbc   : > { %v1055_v48 = vadd.f32 %v2105_v22, %v1005_v56  ;;  %v1056_v49 = vadd.f32 %v2106_v23, %v1006_v45  ;;  %v1057_v50 = vadd.f32 %v2107_v46, %v1007_v57  ;;  %v1058_v51 = vadd.f32 %v2108_v37, %v1008_v1 }
  0xbd   : > { %v1061_v52 = vmul.f32 %v1060_v59, %v2569_v3  ;;  %v1062_v53 = vmul.f32 %v1060_v59, %v2572_v4  ;;  %v1063_v54 = vmul.f32 %v1060_v59, %v2575_v7  ;;  %v1064_v58 = vmul.f32 %v1060_v59, %v2578_v8 }
  0xbe   : > { %v1065_v18 = vmul.f32 %v1060_v59, %v2581_v9  ;;  %v1066_v6 = vmul.f32 %v1060_v59, %v2584_v11  ;;  %v1067_v55 = vmul.f32 %v1060_v59, %v2587_v12  ;;  %v1068_v62 = vmul.f32 %v1060_v59, %v2590_v13 }
  0xbf   : > { %v2110_v2 = vrot.slane %v1061_v52, 11  ;;  %v2111_v5 = vrot.slane %v1062_v53, 11  ;;  %v2112_v56 = vrot.slane %v1063_v54, 11  ;;  %v2113_v45 = vrot.slane %v1064_v58, 11 }
  0xc0   : > { %v2114_v57 = vrot.slane %v1065_v18, 11  ;;  %v2115_v3 = vrot.slane %v1066_v6, 11  ;;  %v2116_v1 = vrot.slane %v1067_v55, 11  ;;  %v2117_v4 = vrot.slane %v1068_v62, 11 }
  0xc1   : > { %v1101_v10 = vadd.f32 %v2110_v2, %v1051_v33  ;;  %v1102_v7 = vadd.f32 %v2111_v5, %v1052_v0  ;;  %v1103_v24 = vadd.f32 %v2112_v56, %v1053_v44  ;;  %v1104_v8 = vadd.f32 %v2113_v45, %v1054_v47 }
  0xc2   : > { %v1105_v40 = vadd.f32 %v2114_v57, %v1055_v48  ;;  %v1106_v9 = vadd.f32 %v2115_v3, %v1056_v49  ;;  %v1107_v19 = vadd.f32 %v2116_v1, %v1057_v50  ;;  %v1108_v11 = vadd.f32 %v2117_v4, %v1058_v51 }
  0xc3   : > { %v1111_v12 = vmul.f32 %v1110_v60, %v2705_v26  ;;  %v1112_v13 = vmul.f32 %v1110_v60, %v2708_v27  ;;  %v1113_v59 = vmul.f32 %v1110_v60, %v2711_v28  ;;  %v1114_v43 = vmul.f32 %v1110_v60, %v2714_v29 }
  0xc4   : > { %v1115_v41 = vmul.f32 %v1110_v60, %v2717_v30  ;;  %v1116_v42 = vmul.f32 %v1110_v60, %v2720_v31  ;;  %v1117_v20 = vmul.f32 %v1110_v60, %v2723_v32  ;;  %v1118_v34 = vmul.f32 %v1110_v60, %v2726_v36 }
  0xc5   : > { %v1119_v21 = vadd.f32 %v1111_v12, %v1101_v10  ;;  %v1120_v22 = vadd.f32 %v1112_v13, %v1102_v7  ;;  %v1121_v23 = vadd.f32 %v1113_v59, %v1103_v24  ;;  %v1122_v46 = vadd.f32 %v1114_v43, %v1104_v8  ;;  %v2987_v13 = vld [vmem:[%s2562_s28 + $0x8] sm:$0xff] }
  0xc6   : > { %v1123_v37 = vadd.f32 %v1115_v41, %v1105_v40  ;;  %v1124_v33 = vadd.f32 %v1116_v42, %v1106_v9  ;;  %v1125_v0 = vadd.f32 %v1117_v20, %v1107_v19  ;;  %v1126_v44 = vadd.f32 %v1118_v34, %v1108_v11  ;;  %v2983_v11 = vld [vmem:[%s2562_s28] sm:$0xff]  ;;  %v2995_v42 = vld [vmem:[%s2562_s28 + $0x10] sm:$0xff]  ;;  %v2999_v34 = vld [vmem:[%s2562_s28 + $0x18] sm:$0xff] }
  0xc7   : > { %v1129_v47 = vmul.f32 %v2924_v61, %v2867_v14  ;;  %v1130_v48 = vmul.f32 %v2924_v61, %v2870_v38  ;;  %v1131_v60 = vmul.f32 %v2924_v61, %v2873_v15  ;;  %v1132_v49 = vmul.f32 %v2924_v61, %v2876_v63 }
  0xc8   : > { %v1133_v50 = vmul.f32 %v2924_v61, %v2881_v16  ;;  %v1134_v51 = vmul.f32 %v2924_v61, %v2884_v17  ;;  %v1135_v52 = vmul.f32 %v2924_v61, %v2887_v39  ;;  %v1136_v53 = vmul.f32 %v2924_v61, %v2890_v35 }
  0xc9   : > { %v1137_v54 = vadd.f32 %v1129_v47, %v1119_v21  ;;  %v1138_v58 = vadd.f32 %v1130_v48, %v1120_v22  ;;  %v1139_v18 = vadd.f32 %v1131_v60, %v1121_v23  ;;  %v1140_v6 = vadd.f32 %v1132_v49, %v1122_v46  ;;  %v3007_v46 = vld [vmem:[%s2562_s28 + $0x20] sm:$0xff]  ;;  %v3017_v47 = vld [vmem:[%s2562_s28 + $0x30] sm:$0xff]  ;;  %v3021_v60 = vld [vmem:[%s2562_s28 + $0x38] sm:$0xff] }
  0xca   : > { %v1141_v55 = vadd.f32 %v1133_v50, %v1123_v37  ;;  %v1142_v62 = vadd.f32 %v1134_v51, %v1124_v33  ;;  %v1143_v2 = vadd.f32 %v1135_v52, %v1125_v0  ;;  %v1144_v5 = vadd.f32 %v1136_v53, %v1126_v44  ;;  %v3011_v33 = vld [vmem:[%s2562_s28 + $0x28] sm:$0xff]  ;;  %s3070_s28 = sld [smem:[#allocation8 + $0x101]] }
  0xcb   : > { %v1159_v56 = vrot.slane %v1137_v54, %v2600_v25  ;;  %v1166_v45 = vrot.slane %v1138_v58, %v2600_v25  ;;  %v1173_v57 = vrot.slane %v1139_v18, %v2600_v25  ;;  %v1180_v61 = vrot.slane %v1140_v6, %v2600_v25 }
  0xcc   : > { %v1204_v3 = vrot.slane %v1141_v55, %v2600_v25  ;;  %v1211_v1 = vrot.slane %v1142_v62, %v2600_v25  ;;  %v1218_v4 = vrot.slane %v1143_v2, %v2600_v25  ;;  %v1225_v10 = vrot.slane %v1144_v5, %v2600_v25 }
  0xcd   : > { %v1181_v7 = vcombine.low %v1159_v56, %v1166_v45  ;;  %v1182_v24 = vcombine.low %v1173_v57, %v1180_v61  ;;  %v1249_v8 = vstv %s2950_s12  ;;  %v1259_v40 = vstv %s2952_s20  ;;  %s3191_s20 = scalar_lea.hbm %s3233_s4, %s2191_s9 }
  0xce   : > { %v1226_v9 = vcombine.low %v1204_v3, %v1211_v1  ;;  %v1227_v19 = vcombine.low %v1218_v4, %v1225_v10  ;;  %v1250_v12 = vmul.f32 %v2983_v11, %v1249_v8  ;;  %v1251_v59 = vmul.f32 %v2987_v13, %v1249_v8 }
  0xcf   : > { %v1189_v43 = vrot.slane %v1181_v7, %v2600_v25  ;;  %v1196_v41 = vrot.slane %v1182_v24, %v2600_v25  ;;  %v1252_v20 = vmul.f32 %v2995_v42, %v1249_v8  ;;  %v1253_v21 = vmul.f32 %v2999_v34, %v1249_v8 }
  0xd0   : > { %v1234_v22 = vrot.slane %v1226_v9, %v2600_v25  ;;  %v1241_v23 = vrot.slane %v1227_v19, %v2600_v25  ;;  %v1254_v37 = vmul.f32 %v3007_v46, %v1249_v8  ;;  %v1255_v0 = vmul.f32 %v3011_v33, %v1249_v8 }
  0xd1   : > { %v1197_v44 = vcombine.low %v1189_v43, %v1196_v41  ;;  %v1256_v48 = vmul.f32 %v3017_v47, %v1249_v8  ;;  %v1257_v49 = vmul.f32 %v3021_v60, %v1249_v8  ;;  %v1260_v50 = vmul.f32 %v2983_v11, %v1259_v40 }
  0xd2   : > { %v1242_v51 = vcombine.low %v1234_v22, %v1241_v23  ;;  %v1261_v52 = vmul.f32 %v2987_v13, %v1259_v40  ;;  %v1262_v53 = vmul.f32 %v2995_v42, %v1259_v40  ;;  %v1263_v54 = vmul.f32 %v2999_v34, %v1259_v40 }
  0xd3   : > { %1245 = vst [vmem:[%s3030_s5] ss:$4 sm:$0xff] %v1197_v44  ;;  %v1264_v58 = vmul.f32 %v3007_v46, %v1259_v40  ;;  %v1265_v18 = vmul.f32 %v3011_v33, %v1259_v40  ;;  %v1266_v6 = vmul.f32 %v3017_v47, %v1259_v40  ;;  %v1267_v55 = vmul.f32 %v3021_v60, %v1259_v40 }
  0xd4   : > { %2120 = vst [vmem:[%s3030_s5 + $0x20] ss:$4 sm:$0xff] %v1242_v51  ;;  %v2123_v62 = vrot.slane %v1260_v50, 9  ;;  %v2124_v2 = vrot.slane %v1261_v52, 9  ;;  %v2125_v5 = vrot.slane %v1262_v53, 9  ;;  %v2126_v56 = vrot.slane %v1263_v54, 9 }
  0xd5   : > { %v2127_v45 = vrot.slane %v1264_v58, 9  ;;  %v2128_v57 = vrot.slane %v1265_v18, 9  ;;  %v2129_v61 = vrot.slane %v1266_v6, 9  ;;  %v2130_v3 = vrot.slane %v1267_v55, 9 }
  0xd6   : > { %v1300_v1 = vadd.f32 %v2123_v62, %v1250_v12  ;;  %v1301_v4 = vadd.f32 %v2124_v2, %v1251_v59  ;;  %v1302_v10 = vadd.f32 %v2125_v5, %v1252_v20  ;;  %v1303_v7 = vadd.f32 %v2126_v56, %v1253_v21 }
  0xd7   : > { %v1304_v24 = vadd.f32 %v2127_v45, %v1254_v37  ;;  %v1305_v8 = vadd.f32 %v2128_v57, %v1255_v0  ;;  %v1306_v40 = vadd.f32 %v2129_v61, %v1256_v48  ;;  %v1307_v9 = vadd.f32 %v2130_v3, %v1257_v49 }
  0xd8   : > { %v1309_v19 = vstv %s2980_s25  ;;  %v1359_v43 = vstv %s2990_s27  ;;  %v1409_v41 = vstv %s3002_s29  ;;  %v3042_v22 = vstv %s3014_s30  ;;  %s1849_s25 = scalar_lea.sflag [#allocation4], %s2556_s26  ;;  %s2339_s27 = scalar_lea.vmem %s1864_s13, 1024 }
  0xd9   : > { %v1310_v23 = vmul.f32 %v2983_v11, %v1309_v19  ;;  %v1311_v44 = vmul.f32 %v2987_v13, %v1309_v19  ;;  %v1312_v50 = vmul.f32 %v2995_v42, %v1309_v19  ;;  %v1313_v12 = vmul.f32 %v2999_v34, %v1309_v19  ;;  %p2340_p8 = scmp.ne.s32.totalorder %s1864_s13, %s2339_s27  ;;  %s2343_s29 = sshll.u32 %s2418_s19, 4  ;;  %s2344_s29 = int_to_ptr.vmem [resolvable:$false] %s2343_s29 }
  0xda   : > { %v1314_v59 = vmul.f32 %v3007_v46, %v1309_v19  ;;  %v1315_v20 = vmul.f32 %v3011_v33, %v1309_v19  ;;  %v1316_v21 = vmul.f32 %v3017_v47, %v1309_v19  ;;  %v1317_v37 = vmul.f32 %v3021_v60, %v1309_v19  ;;  %s2345_s30 = scalar_lea.vmem %s2344_s29, 2048  ;;  %p2346_p3 = scmp.lt.s32.totalorder %s1864_s13, %s2344_s29 }
  0xdb   : > { %v2132_v0 = vrot.slane %v1310_v23, 10  ;;  %v2133_v48 = vrot.slane %v1311_v44, 10  ;;  %v2134_v49 = vrot.slane %v1312_v50, 10  ;;  %v2135_v51 = vrot.slane %v1313_v12, 10  ;;  %p2341_p7 = pnand %p2340_p8, %p3249_p0  ;;  %p2347_p5 = scmp.lt.s32.totalorder %s2345_s30, %s2339_s27 }
  0xdc   : > { %v2136_v52 = vrot.slane %v1314_v59, 10  ;;  %v2137_v53 = vrot.slane %v1315_v20, 10  ;;  %v2138_v54 = vrot.slane %v1316_v21, 10  ;;  %v2139_v58 = vrot.slane %v1317_v37, 10 }
  0xdd   : > { %v1350_v18 = vadd.f32 %v2132_v0, %v1300_v1  ;;  %v1351_v6 = vadd.f32 %v2133_v48, %v1301_v4  ;;  %v1352_v55 = vadd.f32 %v2134_v49, %v1302_v10  ;;  %v1353_v62 = vadd.f32 %v2135_v51, %v1303_v7  ;;  %p2342_p13 = pneg %p2341_p7  ;;  %p2348_p2 = por %p2347_p5, %p2346_p3 }
  0xde   : > { %v1354_v2 = vadd.f32 %v2136_v52, %v1304_v24  ;;  %v1355_v5 = vadd.f32 %v2137_v53, %v1305_v8  ;;  %v1356_v56 = vadd.f32 %v2138_v54, %v1306_v40  ;;  %v1357_v45 = vadd.f32 %v2139_v58, %v1307_v9 }
  0xdf   : > { %v1360_v57 = vmul.f32 %v2983_v11, %v1359_v43  ;;  %v1361_v61 = vmul.f32 %v2987_v13, %v1359_v43  ;;  %v1362_v3 = vmul.f32 %v2995_v42, %v1359_v43  ;;  %v1363_v19 = vmul.f32 %v2999_v34, %v1359_v43  ;;  %p2349_p10 = pnand %p2348_p2, %p2342_p13 }
  0xe0   : > { %v1364_v23 = vmul.f32 %v3007_v46, %v1359_v43  ;;  %v1365_v44 = vmul.f32 %v3011_v33, %v1359_v43  ;;  %v1366_v1 = vmul.f32 %v3017_v47, %v1359_v43  ;;  %v1367_v4 = vmul.f32 %v3021_v60, %v1359_v43 }
  0xe1   : > { %v2141_v10 = vrot.slane %v1360_v57, 11  ;;  %v2142_v7 = vrot.slane %v1361_v61, 11  ;;  %v2143_v24 = vrot.slane %v1362_v3, 11  ;;  %v2144_v8 = vrot.slane %v1363_v19, 11 }
  0xe2   : > { %v2145_v40 = vrot.slane %v1364_v23, 11  ;;  %v2146_v9 = vrot.slane %v1365_v44, 11  ;;  %v2147_v50 = vrot.slane %v1366_v1, 11  ;;  %v2148_v12 = vrot.slane %v1367_v4, 11 }
  0xe3   : > { %v1400_v59 = vadd.f32 %v2141_v10, %v1350_v18  ;;  %v1401_v20 = vadd.f32 %v2142_v7, %v1351_v6  ;;  %v1402_v21 = vadd.f32 %v2143_v24, %v1352_v55  ;;  %v1403_v37 = vadd.f32 %v2144_v8, %v1353_v62 }
  0xe4   : > { %v1404_v0 = vadd.f32 %v2145_v40, %v1354_v2  ;;  %v1405_v48 = vadd.f32 %v2146_v9, %v1355_v5  ;;  %v1406_v49 = vadd.f32 %v2147_v50, %v1356_v56  ;;  %v1407_v51 = vadd.f32 %v2148_v12, %v1357_v45 }
  0xe5   : > { %v1410_v52 = vmul.f32 %v1409_v41, %v2705_v26  ;;  %v1411_v43 = vmul.f32 %v1409_v41, %v2708_v27  ;;  %v1412_v53 = vmul.f32 %v1409_v41, %v2711_v28  ;;  %v1413_v54 = vmul.f32 %v1409_v41, %v2714_v29 }
  0xe6   : > { %v1414_v58 = vmul.f32 %v1409_v41, %v2717_v30  ;;  %v1415_v57 = vmul.f32 %v1409_v41, %v2720_v31  ;;  %v1416_v18 = vmul.f32 %v1409_v41, %v2723_v32  ;;  %v1417_v6 = vmul.f32 %v1409_v41, %v2726_v36 }
  0xe7   : > { %v1418_v55 = vadd.f32 %v1410_v52, %v1400_v59  ;;  %v1419_v62 = vadd.f32 %v1411_v43, %v1401_v20  ;;  %v1420_v2 = vadd.f32 %v1412_v53, %v1402_v21  ;;  %v1421_v5 = vadd.f32 %v1413_v54, %v1403_v37 }
  0xe8   : > { %v1422_v56 = vadd.f32 %v1414_v58, %v1404_v0  ;;  %v1423_v45 = vadd.f32 %v1415_v57, %v1405_v48  ;;  %v1424_v61 = vadd.f32 %v1416_v18, %v1406_v49  ;;  %v1425_v3 = vadd.f32 %v1417_v6, %v1407_v51 }
  0xe9   : > { %v1428_v19 = vmul.f32 %v3042_v22, %v2867_v14  ;;  %v1429_v23 = vmul.f32 %v3042_v22, %v2870_v38  ;;  %v1430_v41 = vmul.f32 %v3042_v22, %v2873_v15  ;;  %v1431_v44 = vmul.f32 %v3042_v22, %v2876_v63 }
  0xea   : > { %v1432_v1 = vmul.f32 %v3042_v22, %v2881_v16  ;;  %v1433_v4 = vmul.f32 %v3042_v22, %v2884_v17  ;;  %v1434_v10 = vmul.f32 %v3042_v22, %v2887_v39  ;;  %v1435_v7 = vmul.f32 %v3042_v22, %v2890_v35 }
  0xeb   : > { %v1436_v24 = vadd.f32 %v1428_v19, %v1418_v55  ;;  %v1437_v8 = vadd.f32 %v1429_v23, %v1419_v62  ;;  %v1438_v40 = vadd.f32 %v1430_v41, %v1420_v2  ;;  %v1439_v9 = vadd.f32 %v1431_v44, %v1421_v5 }
  0xec   : > { %v1440_v50 = vadd.f32 %v1432_v1, %v1422_v56  ;;  %v1441_v12 = vadd.f32 %v1433_v4, %v1423_v45  ;;  %v1442_v59 = vadd.f32 %v1434_v10, %v1424_v61  ;;  %v1443_v20 = vadd.f32 %v1435_v7, %v1425_v3 }
  0xed   : > { %v1458_v21 = vrot.slane %v1436_v24, %v2600_v25  ;;  %v1465_v37 = vrot.slane %v1437_v8, %v2600_v25  ;;  %v1472_v0 = vrot.slane %v1438_v40, %v2600_v25  ;;  %v1479_v48 = vrot.slane %v1439_v9, %v2600_v25 }
  0xee   : > { %v1503_v22 = vrot.slane %v1440_v50, %v2600_v25  ;;  %v1510_v49 = vrot.slane %v1441_v12, %v2600_v25  ;;  %v1517_v51 = vrot.slane %v1442_v59, %v2600_v25  ;;  %v1524_v52 = vrot.slane %v1443_v20, %v2600_v25 }
  0xef   : > { %v1480_v43 = vcombine.low %v1458_v21, %v1465_v37  ;;  %v1481_v53 = vcombine.low %v1472_v0, %v1479_v48  ;;  %v1549_v54 = vstv %s3068_s23  ;;  %v1559_v58 = vstv %s3070_s28 }
  0xf0   : > { %v1525_v57 = vcombine.low %v1503_v22, %v1510_v49  ;;  %v1526_v18 = vcombine.low %v1517_v51, %v1524_v52  ;;  %v1550_v6 = vmul.f32 %v2983_v11, %v1549_v54  ;;  %v1551_v55 = vmul.f32 %v2987_v13, %v1549_v54 }
  0xf1   : > { %v1488_v62 = vrot.slane %v1480_v43, %v2600_v25  ;;  %v1495_v2 = vrot.slane %v1481_v53, %v2600_v25  ;;  %v1552_v5 = vmul.f32 %v2995_v42, %v1549_v54  ;;  %v1553_v56 = vmul.f32 %v2999_v34, %v1549_v54 }
  0xf2   : > { %v1533_v45 = vrot.slane %v1525_v57, %v2600_v25  ;;  %v1540_v61 = vrot.slane %v1526_v18, %v2600_v25  ;;  %v1554_v3 = vmul.f32 %v3007_v46, %v1549_v54  ;;  %v1555_v19 = vmul.f32 %v3011_v33, %v1549_v54 }
  0xf3   : > { %v1496_v23 = vcombine.low %v1488_v62, %v1495_v2  ;;  %v1556_v41 = vmul.f32 %v3017_v47, %v1549_v54  ;;  %v1557_v44 = vmul.f32 %v3021_v60, %v1549_v54  ;;  %v1560_v1 = vmul.f32 %v2983_v11, %v1559_v58 }
  0xf4   : > { %v1541_v4 = vcombine.low %v1533_v45, %v1540_v61  ;;  %v1561_v10 = vmul.f32 %v2987_v13, %v1559_v58  ;;  %v1562_v7 = vmul.f32 %v2995_v42, %v1559_v58  ;;  %v1563_v24 = vmul.f32 %v2999_v34, %v1559_v58 }
  0xf5   : > { %2151 = vst [vmem:[%s3030_s5 + $0x1] ss:$4 sm:$0xff] %v1496_v23  ;;  %v1564_v8 = vmul.f32 %v3007_v46, %v1559_v58  ;;  %v1565_v40 = vmul.f32 %v3011_v33, %v1559_v58  ;;  %v1566_v9 = vmul.f32 %v3017_v47, %v1559_v58  ;;  %v1567_v50 = vmul.f32 %v3021_v60, %v1559_v58 }
  0xf6   : > { %2152 = vst [vmem:[%s3030_s5 + $0x21] ss:$4 sm:$0xff] %v1541_v4  ;;  %v2155_v12 = vrot.slane %v1560_v1, 9  ;;  %v2156_v59 = vrot.slane %v1561_v10, 9  ;;  %v2157_v20 = vrot.slane %v1562_v7, 9  ;;  %v2158_v21 = vrot.slane %v1563_v24, 9 }
  0xf7   : > { %v2159_v37 = vrot.slane %v1564_v8, 9  ;;  %v2160_v0 = vrot.slane %v1565_v40, 9  ;;  %v2161_v48 = vrot.slane %v1566_v9, 9  ;;  %v2162_v22 = vrot.slane %v1567_v50, 9 }
  0xf8   : > { %v1600_v49 = vadd.f32 %v2155_v12, %v1550_v6  ;;  %v1601_v51 = vadd.f32 %v2156_v59, %v1551_v55  ;;  %v1602_v52 = vadd.f32 %v2157_v20, %v1552_v5  ;;  %v1603_v43 = vadd.f32 %v2158_v21, %v1553_v56 }
  0xf9   : > { %v1604_v53 = vadd.f32 %v2159_v37, %v1554_v3  ;;  %v1605_v54 = vadd.f32 %v2160_v0, %v1555_v19  ;;  %v1606_v58 = vadd.f32 %v2161_v48, %v1556_v41  ;;  %v1607_v57 = vadd.f32 %v2162_v22, %v1557_v44 }
  0xfa   : > { %v1609_v18 = vstv %s3098_s6  ;;  %v1659_v62 = vstv %s3102_s21  ;;  %v1709_v2 = vstv %s3108_s7  ;;  %v3132_v45 = vstv %s3114_s8 }
  0xfb   : > { %v1610_v61 = vmul.f32 %v2983_v11, %v1609_v18  ;;  %v1611_v23 = vmul.f32 %v2987_v13, %v1609_v18  ;;  %v1612_v1 = vmul.f32 %v2995_v42, %v1609_v18  ;;  %v1613_v6 = vmul.f32 %v2999_v34, %v1609_v18 }
  0xfc   : > { %v1614_v55 = vmul.f32 %v3007_v46, %v1609_v18  ;;  %v1615_v5 = vmul.f32 %v3011_v33, %v1609_v18  ;;  %v1616_v56 = vmul.f32 %v3017_v47, %v1609_v18  ;;  %v1617_v3 = vmul.f32 %v3021_v60, %v1609_v18 }
  0xfd   : > { %v2164_v19 = vrot.slane %v1610_v61, 10  ;;  %v2165_v41 = vrot.slane %v1611_v23, 10  ;;  %v2166_v44 = vrot.slane %v1612_v1, 10  ;;  %v2167_v4 = vrot.slane %v1613_v6, 10 }
  0xfe   : > { %v2168_v10 = vrot.slane %v1614_v55, 10  ;;  %v2169_v7 = vrot.slane %v1615_v5, 10  ;;  %v2170_v24 = vrot.slane %v1616_v56, 10  ;;  %v2171_v8 = vrot.slane %v1617_v3, 10 }
  0xff   : > { %v1650_v40 = vadd.f32 %v2164_v19, %v1600_v49  ;;  %v1651_v9 = vadd.f32 %v2165_v41, %v1601_v51  ;;  %v1652_v50 = vadd.f32 %v2166_v44, %v1602_v52  ;;  %v1653_v12 = vadd.f32 %v2167_v4, %v1603_v43 }
 0x100   : > { %v1654_v59 = vadd.f32 %v2168_v10, %v1604_v53  ;;  %v1655_v20 = vadd.f32 %v2169_v7, %v1605_v54  ;;  %v1656_v21 = vadd.f32 %v2170_v24, %v1606_v58  ;;  %v1657_v37 = vadd.f32 %v2171_v8, %v1607_v57 }
 0x101   : > { %v1660_v0 = vmul.f32 %v2983_v11, %v1659_v62  ;;  %v1661_v48 = vmul.f32 %v2987_v13, %v1659_v62  ;;  %v1662_v22 = vmul.f32 %v2995_v42, %v1659_v62  ;;  %v1663_v18 = vmul.f32 %v2999_v34, %v1659_v62 }
 0x102   : > { %v1664_v61 = vmul.f32 %v3007_v46, %v1659_v62  ;;  %v1665_v23 = vmul.f32 %v3011_v33, %v1659_v62  ;;  %v1666_v49 = vmul.f32 %v3017_v47, %v1659_v62  ;;  %v1667_v51 = vmul.f32 %v3021_v60, %v1659_v62 }
 0x103   : > { %v2173_v52 = vrot.slane %v1660_v0, 11  ;;  %v2174_v43 = vrot.slane %v1661_v48, 11  ;;  %v2175_v53 = vrot.slane %v1662_v22, 11  ;;  %v2176_v54 = vrot.slane %v1663_v18, 11 }
 0x104   : > { %v2177_v58 = vrot.slane %v1664_v61, 11  ;;  %v2178_v11 = vrot.slane %v1665_v23, 11  ;;  %v2179_v57 = vrot.slane %v1666_v49, 11  ;;  %v2180_v13 = vrot.slane %v1667_v51, 11 }
 0x105   : > { %v1700_v1 = vadd.f32 %v2173_v52, %v1650_v40  ;;  %v1701_v42 = vadd.f32 %v2174_v43, %v1651_v9  ;;  %v1702_v6 = vadd.f32 %v2175_v53, %v1652_v50  ;;  %v1703_v34 = vadd.f32 %v2176_v54, %v1653_v12 }
 0x106   : > { %v1704_v55 = vadd.f32 %v2177_v58, %v1654_v59  ;;  %v1705_v46 = vadd.f32 %v2178_v11, %v1655_v20  ;;  %v1706_v5 = vadd.f32 %v2179_v57, %v1656_v21  ;;  %v1707_v33 = vadd.f32 %v2180_v13, %v1657_v37 }
 0x107   : > { %v1710_v47 = vmul.f32 %v1709_v2, %v2705_v26  ;;  %v1711_v60 = vmul.f32 %v1709_v2, %v2708_v27  ;;  %v1712_v62 = vmul.f32 %v1709_v2, %v2711_v28  ;;  %v1713_v56 = vmul.f32 %v1709_v2, %v2714_v29 }
 0x108   : > { %v1714_v3 = vmul.f32 %v1709_v2, %v2717_v30  ;;  %v1715_v19 = vmul.f32 %v1709_v2, %v2720_v31  ;;  %v1716_v41 = vmul.f32 %v1709_v2, %v2723_v32  ;;  %v1717_v44 = vmul.f32 %v1709_v2, %v2726_v36 }
 0x109   : > { %v1718_v4 = vadd.f32 %v1710_v47, %v1700_v1  ;;  %v1719_v10 = vadd.f32 %v1711_v60, %v1701_v42  ;;  %v1720_v7 = vadd.f32 %v1712_v62, %v1702_v6  ;;  %v1721_v24 = vadd.f32 %v1713_v56, %v1703_v34 }
 0x10a   : > { %v1722_v8 = vadd.f32 %v1714_v3, %v1704_v55  ;;  %v1723_v26 = vadd.f32 %v1715_v19, %v1705_v46  ;;  %v1724_v40 = vadd.f32 %v1716_v41, %v1706_v5  ;;  %v1725_v27 = vadd.f32 %v1717_v44, %v1707_v33 }
 0x10b   : > { %v1728_v28 = vmul.f32 %v3132_v45, %v2867_v14  ;;  %v1729_v29 = vmul.f32 %v3132_v45, %v2870_v38  ;;  %v1730_v30 = vmul.f32 %v3132_v45, %v2873_v15  ;;  %v1731_v31 = vmul.f32 %v3132_v45, %v2876_v63 }
 0x10c   : > { %v1732_v32 = vmul.f32 %v3132_v45, %v2881_v16  ;;  %v1733_v36 = vmul.f32 %v3132_v45, %v2884_v17  ;;  %v1734_v2 = vmul.f32 %v3132_v45, %v2887_v39  ;;  %v1735_v14 = vmul.f32 %v3132_v45, %v2890_v35 }
 0x10d   : > { %v1736_v9 = vadd.f32 %v1728_v28, %v1718_v4  ;;  %v1737_v38 = vadd.f32 %v1729_v29, %v1719_v10  ;;  %v1738_v50 = vadd.f32 %v1730_v30, %v1720_v7  ;;  %v1739_v12 = vadd.f32 %v1731_v31, %v1721_v24 }
 0x10e   : > { %v1740_v15 = vadd.f32 %v1732_v32, %v1722_v8  ;;  %v1741_v59 = vadd.f32 %v1733_v36, %v1723_v26  ;;  %v1742_v20 = vadd.f32 %v1734_v2, %v1724_v40  ;;  %v1743_v63 = vadd.f32 %v1735_v14, %v1725_v27 }
 0x10f   : > { %v1758_v16 = vrot.slane %v1736_v9, %v2600_v25  ;;  %v1765_v17 = vrot.slane %v1737_v38, %v2600_v25  ;;  %v1772_v21 = vrot.slane %v1738_v50, %v2600_v25  ;;  %v1779_v39 = vrot.slane %v1739_v12, %v2600_v25 }
 0x110   : > { %v1803_v35 = vrot.slane %v1740_v15, %v2600_v25  ;;  %v1810_v45 = vrot.slane %v1741_v59, %v2600_v25  ;;  %v1817_v37 = vrot.slane %v1742_v20, %v2600_v25  ;;  %v1824_v0 = vrot.slane %v1743_v63, %v2600_v25 }
 0x111   : > { %v1780_v48 = vcombine.low %v1758_v16, %v1765_v17  ;;  %v1781_v22 = vcombine.low %v1772_v21, %v1779_v39 }
 0x112   : > { %v1825_v18 = vcombine.low %v1803_v35, %v1810_v45  ;;  %v1826_v61 = vcombine.low %v1817_v37, %v1824_v0 }
 0x113   : > { %v1788_v23 = vrot.slane %v1780_v48, %v2600_v25  ;;  %v1795_v49 = vrot.slane %v1781_v22, %v2600_v25 }
 0x114   : > { %v1833_v51 = vrot.slane %v1825_v18, %v2600_v25  ;;  %v1840_v52 = vrot.slane %v1826_v61, %v2600_v25 }
 0x115   : > { %v1796_v43 = vcombine.low %v1788_v23, %v1795_v49 }
 0x116   : > { %v1841_v53 = vcombine.low %v1833_v51, %v1840_v52 }
 0x117   : > { %2183 = vst [vmem:[%s3030_s5 + $0x2] ss:$4 sm:$0xff] %v1796_v43 }
 0x118   : > { %2184 = vst [vmem:[%s3030_s5 + $0x22] ss:$4 sm:$0xff] %v1841_v53 }
 0x119   : > { %2352 = shalt.err (!%p2349_p10)
}
 0x11a   : > { %s2353_s5 = scalar_lea.hbm %s3191_s20, 1024  ;;  %s2357_s28 = scalar_lea.hbm %s3233_s4, 4096 }
 0x11b   : > { %p2354_p11 = scmp.ne.s32.totalorder %s3191_s20, %s2353_s5  ;;  %p2358_p6 = scmp.lt.s32.totalorder %s3191_s20, %s3233_s4 }
 0x11c   : > { %p2359_p9 = scmp.lt.s32.totalorder %s2357_s28, %s2353_s5 }
 0x11d   : > { %p2355_p12 = pnand %p2354_p11, %p3249_p0 }
 0x11e   : > { %p2360_p4 = por %p2359_p9, %p2358_p6 }
 0x11f   : > { %p2356_p1 = pneg %p2355_p12 }
 0x121   : > { %p2361_p8 = pnand %p2360_p4, %p2356_p1 }
 0x123   : > { %2364 = shalt.err (!%p2361_p8)
}
 0x124   : > { %2206 = dma.vmem_to_hbm [thread:$0]  (%p3249_p0), %s1864_s13, 1024, %s3191_s20, %s1849_s25  }
 0x125 PF: > { %p2233_p7 = scmp.ge.s32.totalorder %s2411_s18, 2  ;;  %s1875_s7 = sand.u32 1, %s2399_s15  }
 0x126   : > { %p3250_p13 = scmp.ne.s32.totalorder %s3239_s22, 0  ;;  %s1876_s8 = scalar_lea.sflag [#allocation4], %s1875_s7 }
 0x128   : > { %p2223_p3 = pnand %p2233_p7, %p3250_p13 }
 0x12a   : > { %p2224_p5 = pneg %p2223_p3 }
 0x12c   : > { %2394 = dma.done.wait (%p2224_p5), %s1876_s8, 1024  }
 0x12d   : > { %2396 = vsyncadd (%p2224_p5), %s1876_s8, 4294966272  ;;  %p19_p2 = scmp.ge.s32.totalorder %s2491_s24, 6   ;;  %s3251_s15 = smov %s2403_s16 }
 0x12e   : > { %s3252_s16 = smov %s2407_s17  ;;  %s3253_s17 = smov %s2510_s10 }
 0x12f   : > { %s3254_s18 = smov %s2491_s24  ;;  %21 = sbr.rel (!%p19_p2) target bundleno = 7 (0x7), region = 99 }
 0x134   :  { %1881 = vsyncpa [#allocation3], 1 }
 0x135   :  { %1883 = vsyncpa [#allocation3 + $0x1], 1 }
 0x136   :  { %1884 = vsyncpa [#allocation4], 1 }
 0x137   :  { %1886 = vsyncpa [#allocation4 + $0x1], 1 }
 0x138   :  { %1887 = vsyncpa [#allocation5], 1 }
 0x139   :  { %1889 = vsyncpa [#allocation5 + $0x1], 1 }
 0x13a   :  { %1890 = vsyncpa [#allocation7], 1 }

</bundles_post_ra>
